<compile_context>
chip_gen: v6e
topology: v6e:2x2x1
jax: 0.10.0
libtpu: 0.0.40
codegen_flags: <defaults>
</compile_context>

<pallas_src>
import functools
import math

import jax
import jax.numpy as jnp
from jax import lax
from jax.experimental import pallas as pl
from jax.experimental.pallas import tpu as pltpu


# ---------------------------------------------------------------------------
# helpers
# ---------------------------------------------------------------------------
def _nt(a, b):
    """a @ b.T : contract last dims of a and b, f32 accumulation on the MXU."""
    return lax.dot_general(a, b, (((1,), (1,)), ((), ())),
                           preferred_element_type=jnp.float32)


def _softmax_rows(scores, approx_recip):
    scores = scores - jnp.max(scores, axis=-1, keepdims=True)
    p = jnp.exp(scores)
    return p * pl.reciprocal(jnp.sum(p, axis=-1, keepdims=True),
                             approx=approx_recip)


# ---------------------------------------------------------------------------
# Fast fused kernel: QKV projection + attention + scrambled merge + O-proj.
# Requires D % S == 0 and S % H == 0 (merged row-bands are head-pure).
# ---------------------------------------------------------------------------
def _mha_band_kernel(*refs, num_heads, seq_len, batch_block, inv_scale,
                     has_mask, mask_per_batch, mxu_dtype, approx_recip):
    if has_mask:
        (x_ref, wqk_ref, bqk_ref, wvt_ref, bvt_ref, wog_ref, bo_ref,
         mask_ref, o_ref) = refs
    else:
        (x_ref, wqk_ref, bqk_ref, wvt_ref, bvt_ref, wog_ref, bo_ref,
         o_ref) = refs
        mask_ref = None

    S, Bt, H = seq_len, batch_block, num_heads
    D = x_ref.shape[-1]
    dk = D // H
    G = D // S                       # lane blocks of width S per merged row
    band = S // H                    # merged rows produced by one head

    cast = (lambda t: t) if mxu_dtype is None else (lambda t: t.astype(mxu_dtype))

    x = x_ref[...]                                            # (Bt*S, D)

    # Fused Q|K projection: one MXU matmul over all Bt*S rows.
    qk = _nt(cast(x), cast(wqk_ref[...])) + bqk_ref[...]      # (Bt*S, 2D) f32
    # V projection computed TRANSPOSED (features on sublanes): the per-(h, g)
    # slices below then feed the scrambled merge with no in-kernel transpose.
    vt = _nt(cast(wvt_ref[...]), cast(x)) + bvt_ref[...]      # (D, Bt*S) f32

    bo_row = bo_ref[...]                                      # (1, D)
    wo_blocks = [cast(wog_ref[g]) for g in range(G)]          # G x (D, S)

    for b in range(Bt):                      # static unroll over stacked batch
        r0 = b * S
        q = qk[r0:r0 + S, 0:D] * inv_scale   # fold 1/sqrt(dk) into Q once
        k = qk[r0:r0 + S, D:2 * D]
        vtb = vt[:, r0:r0 + S]                                # (D, S)

        if mask_ref is not None:
            m = mask_ref[b] if mask_per_batch else mask_ref[0]
            bias = m.astype(jnp.float32) * (-1e9)
        else:
            bias = None

        # Per-head results are stored to o_ref before the next head starts,
        # so the static unroll does not accumulate live ranges across heads.
        for h in range(H):
            qh = q[:, h * dk:(h + 1) * dk]
            kh = k[:, h * dk:(h + 1) * dk]
            s = _nt(cast(qh), cast(kh))                       # (S, S) f32
            if bias is not None:
                s = s + bias
            p = cast(_softmax_rows(s, approx_recip))          # (S, S)

            # Scrambled merge fused into the output projection:
            #   merged rows [h*band, (h+1)*band) = sum_g block(h, g) @ Wo_g^T
            acc = None
            for g in range(G):
                a0 = h * dk + g * band
                blk = _nt(cast(vtb[a0:a0 + band, :]), p)      # (band, S)  f32
                contrib = _nt(cast(blk), wo_blocks[g])        # (band, D)  f32
                acc = contrib if acc is None else acc + contrib
            o_ref[r0 + h * band:r0 + (h + 1) * band, :] = (
                acc + bo_row).astype(o_ref.dtype)


# ---------------------------------------------------------------------------
# General-shape fallback kernel: QKV + attention + head transpose in-kernel,
# scrambled merge (pure reshape) + output projection finished in XLA.
# ---------------------------------------------------------------------------
def _mha_ctxt_kernel(*refs, num_heads, seq_len, batch_block, inv_scale,
                     has_mask, mask_per_batch, mxu_dtype, approx_recip):
    if has_mask:
        x_ref, wqk_ref, bqk_ref, wvt_ref, bvt_ref, mask_ref, o_ref = refs
    else:
        x_ref, wqk_ref, bqk_ref, wvt_ref, bvt_ref, o_ref = refs
        mask_ref = None

    S, Bt, H = seq_len, batch_block, num_heads
    D = x_ref.shape[-1]
    dk = D // H

    cast = (lambda t: t) if mxu_dtype is None else (lambda t: t.astype(mxu_dtype))

    x = x_ref[...]
    qk = _nt(cast(x), cast(wqk_ref[...])) + bqk_ref[...]
    vt = _nt(cast(wvt_ref[...]), cast(x)) + bvt_ref[...]      # (D, Bt*S)

    for b in range(Bt):
        r0 = b * S
        q = qk[r0:r0 + S, 0:D] * inv_scale
        k = qk[r0:r0 + S, D:2 * D]
        vtb = vt[:, r0:r0 + S]
        if mask_ref is not None:
            m = mask_ref[b] if mask_per_batch else mask_ref[0]
            bias = m.astype(jnp.float32) * (-1e9)
        else:
            bias = None
        for h in range(H):
            qh = q[:, h * dk:(h + 1) * dk]
            kh = k[:, h * dk:(h + 1) * dk]
            s = _nt(cast(qh), cast(kh))
            if bias is not None:
                s = s + bias
            p = cast(_softmax_rows(s, approx_recip))
            ctxT = _nt(cast(vtb[h * dk:(h + 1) * dk, :]), p)  # (dk, S)
            o_ref[b, h * dk:(h + 1) * dk, :] = ctxT.astype(o_ref.dtype)


# ---------------------------------------------------------------------------
# Wrapper
# ---------------------------------------------------------------------------
def mha_forward(hidden_state, params, num_heads, attention_mask=None, *,
                mxu_dtype=None, batch_block=None, approx_reciprocal=True):
    """Fused multi-head attention forward, hidden_state: (B, S, D)."""
    wq, bq, wk, bk, wv, bv, wo, bo = params
    B, S, D = hidden_state.shape
    assert D % num_heads == 0, "hidden_size must be divisible by num_heads"
    dk = D // num_heads
    inv_scale = 1.0 / math.sqrt(dk)

    fused_output = (D % S == 0) and (S % num_heads == 0)

    # Batch elements stacked per grid step: bigger MXU M-dim, fewer grid steps.
    if batch_block is None:
        batch_block = 1
        for cand in (8, 4, 2, 1):
            if B % cand == 0 and ((cand * S) % 8 == 0 or cand == B):
                batch_block = cand
                break
        if (batch_block * S) % 8 != 0:
            batch_block = B          # block must be 8-aligned or full extent
    bt = batch_block
    assert B % bt == 0 and ((bt * S) % 8 == 0 or bt == B)
    grid = (B // bt,)

    wdt = jnp.float32 if mxu_dtype is None else mxu_dtype  # weight HBM dtype

    # Q|K stacked for one row-major projection; V projected transposed.
    wqk = jnp.concatenate([wq, wk], axis=0).astype(wdt)              # (2D, D)
    bqk = jnp.concatenate([bq, bk], axis=0)[None, :].astype(jnp.float32)

    if fused_output:
        G = D // S
        band = S // num_heads
        # Head-local permutation of V's output features so the per-(head, g)
        # slices used by the fused scrambled merge are contiguous (free, done
        # once on the weights in the wrapper).
        new = jnp.arange(D)
        head = new // dk
        loc = new % dk
        old = head * dk + (loc % band) * G + (loc // band)
        wv_k = wv[old, :].astype(wdt)                                 # (D, D)
        bv_k = bv[old][:, None].astype(jnp.float32)                   # (D, 1)
        # Wo pre-split by lane block g: wo_g[g, j, s] == wo[j, g*S + s]
        wo_g = jnp.transpose(wo.reshape(D, G, S), (1, 0, 2)).astype(wdt)
        bo_r = bo[None, :].astype(jnp.float32)                        # (1, D)
    else:
        wv_k = wv.astype(wdt)
        bv_k = bv[:, None].astype(jnp.float32)

    x2 = hidden_state.reshape(B * S, D)      # lane-dense row view (free, XLA)

    in_specs = [
        pl.BlockSpec((bt * S, D), lambda i: (i, 0)),         # activations
        pl.BlockSpec((2 * D, D), lambda i: (0, 0)),          # stacked Q|K w
        pl.BlockSpec((1, 2 * D), lambda i: (0, 0)),          # stacked Q|K b
        pl.BlockSpec((D, D), lambda i: (0, 0)),              # V weight (perm)
        pl.BlockSpec((D, 1), lambda i: (0, 0)),              # V bias (column)
    ]
    inputs = [x2, wqk, bqk, wv_k, bv_k]
    if fused_output:
        in_specs += [pl.BlockSpec((G, D, S), lambda i: (0, 0, 0)),   # Wo blocks
                     pl.BlockSpec((1, D), lambda i: (0, 0))]         # Wo bias
        inputs += [wo_g, bo_r]

    has_mask = attention_mask is not None
    mask_per_batch = False
    mask_bytes = 0
    if has_mask:
        # mask assumed head-shared: (S,S), (1,1,S,S) or (B,1,S,S)
        m = jnp.asarray(attention_mask, jnp.float32).reshape(-1, S, S)
        mask_per_batch = m.shape[0] != 1
        if mask_per_batch:
            assert m.shape[0] == B
            in_specs.append(pl.BlockSpec((bt, S, S), lambda i: (i, 0, 0)))
        else:
            in_specs.append(pl.BlockSpec((1, S, S), lambda i: (0, 0, 0)))
        inputs.append(m)
        mask_bytes = 4 * int(m.size)

    cost = pl.CostEstimate(
        flops=int(B * (8 * S * D * D + 4 * S * S * D)),
        transcendentals=int(B * num_heads * S * S),
        bytes_accessed=int(8 * B * S * D + 4 * (4 * D * D + 5 * D)
                           + mask_bytes),
    )
    cparams = pltpu.CompilerParams(
        dimension_semantics=("parallel",),
        vmem_limit_bytes=32 * 1024 * 1024,
    )
    common = dict(num_heads=num_heads, seq_len=S, batch_block=bt,
                  inv_scale=inv_scale, has_mask=has_mask,
                  mask_per_batch=mask_per_batch, mxu_dtype=mxu_dtype,
                  approx_recip=approx_reciprocal)

    if fused_output:
        out2 = pl.pallas_call(
            functools.partial(_mha_band_kernel, **common),
            out_shape=jax.ShapeDtypeStruct((B * S, D), hidden_state.dtype),
            grid=grid,
            in_specs=in_specs,
            out_specs=pl.BlockSpec((bt * S, D), lambda i: (i, 0)),
            compiler_params=cparams,
            cost_estimate=cost,
        )(*inputs)
        return out2.reshape(B, S, D)

    # Fallback for shapes where the merged row-bands are not head-pure.
    ctxT = pl.pallas_call(
        functools.partial(_mha_ctxt_kernel, **common),
        out_shape=jax.ShapeDtypeStruct((B, D, S), jnp.float32),
        grid=grid,
        in_specs=in_specs,
        out_specs=pl.BlockSpec((bt, D, S), lambda i: (i, 0, 0)),
        compiler_params=cparams,
        cost_estimate=cost,
    )(*inputs)
    merged = ctxT.reshape(B, S, D)      # == transpose(-1,-2).view merge
    return (merged @ wo.T + bo).astype(hidden_state.dtype)


# ---------------------------------------------------------------------------
# Pure-JAX reference (same semantics as the PyTorch module)
# ---------------------------------------------------------------------------
def mha_reference(hidden_state, params, num_heads, attention_mask=None):
    wq, bq, wk, bk, wv, bv, wo, bo = params
    B, S, D = hidden_state.shape
    dk = D // num_heads

    def split(t):
        return jnp.transpose(t.reshape(B, S, num_heads, dk), (0, 2, 1, 3))

    q = split(hidden_state @ wq.T + bq)
    k = split(hidden_state @ wk.T + bk)
    v = split(hidden_state @ wv.T + bv)
    scores = jnp.einsum("bhqd,bhkd->bhqk", q, k) / jnp.sqrt(jnp.float32(dk))
    if attention_mask is not None:
        m = jnp.asarray(attention_mask, jnp.float32).reshape((-1, 1, S, S))
        scores = scores + jnp.broadcast_to(m, scores.shape) * (-1e9)
    probs = jax.nn.softmax(scores, axis=-1)
    o = jnp.einsum("bhqk,bhkd->bhqd", probs, v)
    o = jnp.swapaxes(o, -1, -2).reshape(B, -1, D)   # PyTorch's scrambled merge
    return o @ wo.T + bo


if __name__ == "__main__":
    B, S, D, H = 2, 8, 32, 4   # batch, seq_len, hidden_size, heads (dk = 8)

    key = jax.random.PRNGKey(0)
    keys = jax.random.split(key, 9)
    x = jax.random.normal(keys[0], (B, S, D), dtype=jnp.float32)

    def init_linear(kw, kb, dout, din):
        bound = 1.0 / math.sqrt(din)
        w = jax.random.uniform(kw, (dout, din), jnp.float32, -bound, bound)
        b = jax.random.uniform(kb, (dout,), jnp.float32, -bound, bound)
        return w, b

    wq, bq = init_linear(keys[1], keys[2], D, D)
    wk, bk = init_linear(keys[3], keys[4], D, D)
    wv, bv = init_linear(keys[5], keys[6], D, D)
    wo, bo = init_linear(keys[7], keys[8], D, D)
    params = (wq, bq, wk, bk, wv, bv, wo, bo)

    # f32 MXU operands, approximate EUP reciprocal for the softmax denominator.
    out = jax.block_until_ready(mha_forward(x, params, num_heads=H))
    ref = mha_reference(x, params, num_heads=H)
    assert out.shape == (B, S, D), out.shape
    assert jnp.allclose(out, ref, atol=2e-3, rtol=2e-3), \
        float(jnp.max(jnp.abs(out - ref)))

    # shared (1,1,S,S) causal mask, reused across the batch via the index_map
    causal_mask = jnp.triu(jnp.ones((S, S), jnp.float32), k=1)[None, None]
    out_m = jax.block_until_ready(
        mha_forward(x, params, num_heads=H, attention_mask=causal_mask))
    ref_m = mha_reference(x, params, num_heads=H, attention_mask=causal_mask)
    assert jnp.allclose(out_m, ref_m, atol=2e-3, rtol=2e-3), \
        float(jnp.max(jnp.abs(out_m - ref_m)))

    # bf16 MXU operands (recommended on v6e/v7x): bf16 weights in HBM, f32
    # accumulation and f32 softmax, so only operand-rounding error remains.
    out_bf = jax.block_until_ready(
        mha_forward(x, params, num_heads=H, mxu_dtype=jnp.bfloat16))
    assert jnp.allclose(out_bf, ref, atol=5e-2, rtol=5e-2), \
        float(jnp.max(jnp.abs(out_bf - ref)))

    print("KERNEL_OK")
</pallas_src>

<mosaic_0001>
module attributes {stable_mosaic.version = 11 : i64} {
  func.func @_mha_band_kernel(%arg0: i32, %arg1: memref<16x32xf32, #tpu.memory_space<vmem>>, %arg2: memref<64x32xf32, #tpu.memory_space<vmem>>, %arg3: memref<1x64xf32, #tpu.memory_space<vmem>>, %arg4: memref<32x32xf32, #tpu.memory_space<vmem>>, %arg5: memref<32x1xf32, #tpu.memory_space<vmem>>, %arg6: memref<4x32x8xf32, #tpu.memory_space<vmem>>, %arg7: memref<1x32xf32, #tpu.memory_space<vmem>>, %arg8: memref<16x32xf32, #tpu.memory_space<vmem>>) attributes {dimension_semantics = [#tpu.dimension_semantics<parallel>], iteration_bounds = array<i64: 1>, scalar_prefetch = 0 : i64, scratch_operands = 0 : i64, tpu.core_type = #tpu.core_type<tc>, window_params = [{transform_indices = @transform_0, window_bounds = array<i64: 16, 32>}, {pipeline_mode = #tpu.pipeline_mode<synchronous>, transform_indices = @transform_1, window_bounds = array<i64: 64, 32>}, {pipeline_mode = #tpu.pipeline_mode<synchronous>, transform_indices = @transform_2, window_bounds = array<i64: 1, 64>}, {pipeline_mode = #tpu.pipeline_mode<synchronous>, transform_indices = @transform_3, window_bounds = array<i64: 32, 32>}, {pipeline_mode = #tpu.pipeline_mode<synchronous>, transform_indices = @transform_4, window_bounds = array<i64: 32, 1>}, {pipeline_mode = #tpu.pipeline_mode<synchronous>, transform_indices = @transform_5, window_bounds = array<i64: 4, 32, 8>}, {pipeline_mode = #tpu.pipeline_mode<synchronous>, transform_indices = @transform_6, window_bounds = array<i64: 1, 32>}, {transform_indices = @transform_7, window_bounds = array<i64: 16, 32>}]} {
    %c0 = arith.constant 0 : index
    %c0_0 = arith.constant 0 : index
    %0 = vector.load %arg1[%c0, %c0_0] : memref<16x32xf32, #tpu.memory_space<vmem>>, vector<16x32xf32>
    %c0_1 = arith.constant 0 : index
    %c0_2 = arith.constant 0 : index
    %1 = vector.load %arg2[%c0_1, %c0_2] : memref<64x32xf32, #tpu.memory_space<vmem>>, vector<64x32xf32>
    %cst = arith.constant dense<0.000000e+00> : vector<16x64xf32>
    %2 = tpu.matmul %0, %1, %cst {dimension_numbers = #tpu.dot_dimension_numbers<[1], [1], [0], [0], [0, 0, 1, 0], [], []>} : vector<16x32xf32>, vector<64x32xf32>, vector<16x64xf32> -> vector<16x64xf32>
    %c0_3 = arith.constant 0 : index
    %c0_4 = arith.constant 0 : index
    %3 = vector.load %arg3[%c0_3, %c0_4] : memref<1x64xf32, #tpu.memory_space<vmem>>, vector<1x64xf32>
    %4 = vector.broadcast %3 : vector<1x64xf32> to vector<16x64xf32>
    %5 = arith.addf %2, %4 : vector<16x64xf32>
    %c0_5 = arith.constant 0 : index
    %c0_6 = arith.constant 0 : index
    %6 = vector.load %arg4[%c0_5, %c0_6] : memref<32x32xf32, #tpu.memory_space<vmem>>, vector<32x32xf32>
    %cst_7 = arith.constant dense<0.000000e+00> : vector<32x16xf32>
    %7 = tpu.matmul %6, %0, %cst_7 {dimension_numbers = #tpu.dot_dimension_numbers<[1], [1], [0], [0], [0, 0, 1, 0], [], []>} : vector<32x32xf32>, vector<16x32xf32>, vector<32x16xf32> -> vector<32x16xf32>
    %c0_8 = arith.constant 0 : index
    %c0_9 = arith.constant 0 : index
    %8 = vector.load %arg5[%c0_8, %c0_9] : memref<32x1xf32, #tpu.memory_space<vmem>>, vector<32x1xf32>
    %9 = vector.broadcast %8 : vector<32x1xf32> to vector<32x16xf32>
    %10 = arith.addf %7, %9 : vector<32x16xf32>
    %c0_10 = arith.constant 0 : index
    %c0_11 = arith.constant 0 : index
    %11 = vector.load %arg7[%c0_10, %c0_11] : memref<1x32xf32, #tpu.memory_space<vmem>>, vector<1x32xf32>
    %c0_12 = arith.constant 0 : index
    %c0_13 = arith.constant 0 : index
    %c0_14 = arith.constant 0 : index
    %12 = vector.load %arg6[%c0_12, %c0_13, %c0_14] : memref<4x32x8xf32, #tpu.memory_space<vmem>>, vector<1x32x8xf32>
    %13 = vector.shape_cast %12 : vector<1x32x8xf32> to vector<32x8xf32>
    %c1 = arith.constant 1 : index
    %c0_15 = arith.constant 0 : index
    %c0_16 = arith.constant 0 : index
    %14 = vector.load %arg6[%c1, %c0_15, %c0_16] : memref<4x32x8xf32, #tpu.memory_space<vmem>>, vector<1x32x8xf32>
    %15 = vector.shape_cast %14 : vector<1x32x8xf32> to vector<32x8xf32>
    %c2 = arith.constant 2 : index
    %c0_17 = arith.constant 0 : index
    %c0_18 = arith.constant 0 : index
    %16 = vector.load %arg6[%c2, %c0_17, %c0_18] : memref<4x32x8xf32, #tpu.memory_space<vmem>>, vector<1x32x8xf32>
    %17 = vector.shape_cast %16 : vector<1x32x8xf32> to vector<32x8xf32>
    %c3 = arith.constant 3 : index
    %c0_19 = arith.constant 0 : index
    %c0_20 = arith.constant 0 : index
    %18 = vector.load %arg6[%c3, %c0_19, %c0_20] : memref<4x32x8xf32, #tpu.memory_space<vmem>>, vector<1x32x8xf32>
    %19 = vector.shape_cast %18 : vector<1x32x8xf32> to vector<32x8xf32>
    %20 = vector.extract_strided_slice %5 {offsets = [0, 0], sizes = [8, 32], strides = [1, 1]} : vector<16x64xf32> to vector<8x32xf32>
    %cst_21 = arith.constant 0.353553385 : f32
    %21 = vector.broadcast %cst_21 : f32 to vector<8x32xf32>
    %22 = arith.mulf %20, %21 : vector<8x32xf32>
    %23 = vector.extract_strided_slice %5 {offsets = [0, 32], sizes = [8, 32], strides = [1, 1]} : vector<16x64xf32> to vector<8x32xf32>
    %24 = vector.extract_strided_slice %10 {offsets = [0, 0], sizes = [32, 8], strides = [1, 1]} : vector<32x16xf32> to vector<32x8xf32>
    %25 = vector.extract_strided_slice %22 {offsets = [0, 0], sizes = [8, 8], strides = [1, 1]} : vector<8x32xf32> to vector<8x8xf32>
    %26 = vector.extract_strided_slice %23 {offsets = [0, 0], sizes = [8, 8], strides = [1, 1]} : vector<8x32xf32> to vector<8x8xf32>
    %cst_22 = arith.constant dense<0.000000e+00> : vector<8x8xf32>
    %27 = tpu.matmul %25, %26, %cst_22 {dimension_numbers = #tpu.dot_dimension_numbers<[1], [1], [0], [0], [0, 0, 1, 0], [], []>} : vector<8x8xf32>, vector<8x8xf32>, vector<8x8xf32> -> vector<8x8xf32>
    %cst_23 = arith.constant dense<0xFF800000> : vector<8xf32>
    %28 = vector.multi_reduction <maximumf>, %27, %cst_23 [1] : vector<8x8xf32> to vector<8xf32>
    %29 = vector.shape_cast %28 : vector<8xf32> to vector<8x1xf32>
    %30 = vector.broadcast %29 : vector<8x1xf32> to vector<8x8xf32>
    %31 = arith.subf %27, %30 : vector<8x8xf32>
    %32 = math.exp %31 : vector<8x8xf32>
    %cst_24 = arith.constant dense<0.000000e+00> : vector<8xf32>
    %33 = vector.multi_reduction <add>, %32, %cst_24 [1] : vector<8x8xf32> to vector<8xf32>
    %34 = vector.shape_cast %33 : vector<8xf32> to vector<8x1xf32>
    %35 = tpu.reciprocal %34 {approx = true} : vector<8x1xf32> -> vector<8x1xf32>
    %36 = vector.broadcast %35 : vector<8x1xf32> to vector<8x8xf32>
    %37 = arith.mulf %32, %36 : vector<8x8xf32>
    %38 = vector.extract_strided_slice %24 {offsets = [0, 0], sizes = [2, 8], strides = [1, 1]} : vector<32x8xf32> to vector<2x8xf32>
    %cst_25 = arith.constant dense<0.000000e+00> : vector<2x8xf32>
    %39 = tpu.matmul %38, %37, %cst_25 {dimension_numbers = #tpu.dot_dimension_numbers<[1], [1], [0], [0], [0, 0, 1, 0], [], []>} : vector<2x8xf32>, vector<8x8xf32>, vector<2x8xf32> -> vector<2x8xf32>
    %cst_26 = arith.constant dense<0.000000e+00> : vector<2x32xf32>
    %40 = tpu.matmul %39, %13, %cst_26 {dimension_numbers = #tpu.dot_dimension_numbers<[1], [1], [0], [0], [0, 0, 1, 0], [], []>} : vector<2x8xf32>, vector<32x8xf32>, vector<2x32xf32> -> vector<2x32xf32>
    %41 = vector.extract_strided_slice %24 {offsets = [2, 0], sizes = [2, 8], strides = [1, 1]} : vector<32x8xf32> to vector<2x8xf32>
    %cst_27 = arith.constant dense<0.000000e+00> : vector<2x8xf32>
    %42 = tpu.matmul %41, %37, %cst_27 {dimension_numbers = #tpu.dot_dimension_numbers<[1], [1], [0], [0], [0, 0, 1, 0], [], []>} : vector<2x8xf32>, vector<8x8xf32>, vector<2x8xf32> -> vector<2x8xf32>
    %cst_28 = arith.constant dense<0.000000e+00> : vector<2x32xf32>
    %43 = tpu.matmul %42, %15, %cst_28 {dimension_numbers = #tpu.dot_dimension_numbers<[1], [1], [0], [0], [0, 0, 1, 0], [], []>} : vector<2x8xf32>, vector<32x8xf32>, vector<2x32xf32> -> vector<2x32xf32>
    %44 = arith.addf %40, %43 : vector<2x32xf32>
    %45 = vector.extract_strided_slice %24 {offsets = [4, 0], sizes = [2, 8], strides = [1, 1]} : vector<32x8xf32> to vector<2x8xf32>
    %cst_29 = arith.constant dense<0.000000e+00> : vector<2x8xf32>
    %46 = tpu.matmul %45, %37, %cst_29 {dimension_numbers = #tpu.dot_dimension_numbers<[1], [1], [0], [0], [0, 0, 1, 0], [], []>} : vector<2x8xf32>, vector<8x8xf32>, vector<2x8xf32> -> vector<2x8xf32>
    %cst_30 = arith.constant dense<0.000000e+00> : vector<2x32xf32>
    %47 = tpu.matmul %46, %17, %cst_30 {dimension_numbers = #tpu.dot_dimension_numbers<[1], [1], [0], [0], [0, 0, 1, 0], [], []>} : vector<2x8xf32>, vector<32x8xf32>, vector<2x32xf32> -> vector<2x32xf32>
    %48 = arith.addf %44, %47 : vector<2x32xf32>
    %49 = vector.extract_strided_slice %24 {offsets = [6, 0], sizes = [2, 8], strides = [1, 1]} : vector<32x8xf32> to vector<2x8xf32>
    %cst_31 = arith.constant dense<0.000000e+00> : vector<2x8xf32>
    %50 = tpu.matmul %49, %37, %cst_31 {dimension_numbers = #tpu.dot_dimension_numbers<[1], [1], [0], [0], [0, 0, 1, 0], [], []>} : vector<2x8xf32>, vector<8x8xf32>, vector<2x8xf32> -> vector<2x8xf32>
    %cst_32 = arith.constant dense<0.000000e+00> : vector<2x32xf32>
    %51 = tpu.matmul %50, %19, %cst_32 {dimension_numbers = #tpu.dot_dimension_numbers<[1], [1], [0], [0], [0, 0, 1, 0], [], []>} : vector<2x8xf32>, vector<32x8xf32>, vector<2x32xf32> -> vector<2x32xf32>
    %52 = arith.addf %48, %51 : vector<2x32xf32>
    %53 = vector.broadcast %11 : vector<1x32xf32> to vector<2x32xf32>
    %54 = arith.addf %52, %53 : vector<2x32xf32>
    %c0_33 = arith.constant 0 : index
    %c0_34 = arith.constant 0 : index
    %55 = vector.load %arg8[%c0_33, %c0_34] : memref<16x32xf32, #tpu.memory_space<vmem>>, vector<2x32xf32>
    tpu.vector_store %arg8[%c0_33, %c0_34], %54 {strides = array<i32>} : memref<16x32xf32, #tpu.memory_space<vmem>>, vector<2x32xf32>,
    %56 = vector.extract_strided_slice %22 {offsets = [0, 8], sizes = [8, 8], strides = [1, 1]} : vector<8x32xf32> to vector<8x8xf32>
    %57 = vector.extract_strided_slice %23 {offsets = [0, 8], sizes = [8, 8], strides = [1, 1]} : vector<8x32xf32> to vector<8x8xf32>
    %cst_35 = arith.constant dense<0.000000e+00> : vector<8x8xf32>
    %58 = tpu.matmul %56, %57, %cst_35 {dimension_numbers = #tpu.dot_dimension_numbers<[1], [1], [0], [0], [0, 0, 1, 0], [], []>} : vector<8x8xf32>, vector<8x8xf32>, vector<8x8xf32> -> vector<8x8xf32>
    %cst_36 = arith.constant dense<0xFF800000> : vector<8xf32>
    %59 = vector.multi_reduction <maximumf>, %58, %cst_36 [1] : vector<8x8xf32> to vector<8xf32>
    %60 = vector.shape_cast %59 : vector<8xf32> to vector<8x1xf32>
    %61 = vector.broadcast %60 : vector<8x1xf32> to vector<8x8xf32>
    %62 = arith.subf %58, %61 : vector<8x8xf32>
    %63 = math.exp %62 : vector<8x8xf32>
    %cst_37 = arith.constant dense<0.000000e+00> : vector<8xf32>
    %64 = vector.multi_reduction <add>, %63, %cst_37 [1] : vector<8x8xf32> to vector<8xf32>
    %65 = vector.shape_cast %64 : vector<8xf32> to vector<8x1xf32>
    %66 = tpu.reciprocal %65 {approx = true} : vector<8x1xf32> -> vector<8x1xf32>
    %67 = vector.broadcast %66 : vector<8x1xf32> to vector<8x8xf32>
    %68 = arith.mulf %63, %67 : vector<8x8xf32>
    %69 = vector.extract_strided_slice %24 {offsets = [8, 0], sizes = [2, 8], strides = [1, 1]} : vector<32x8xf32> to vector<2x8xf32>
    %cst_38 = arith.constant dense<0.000000e+00> : vector<2x8xf32>
    %70 = tpu.matmul %69, %68, %cst_38 {dimension_numbers = #tpu.dot_dimension_numbers<[1], [1], [0], [0], [0, 0, 1, 0], [], []>} : vector<2x8xf32>, vector<8x8xf32>, vector<2x8xf32> -> vector<2x8xf32>
    %cst_39 = arith.constant dense<0.000000e+00> : vector<2x32xf32>
    %71 = tpu.matmul %70, %13, %cst_39 {dimension_numbers = #tpu.dot_dimension_numbers<[1], [1], [0], [0], [0, 0, 1, 0], [], []>} : vector<2x8xf32>, vector<32x8xf32>, vector<2x32xf32> -> vector<2x32xf32>
    %72 = vector.extract_strided_slice %24 {offsets = [10, 0], sizes = [2, 8], strides = [1, 1]} : vector<32x8xf32> to vector<2x8xf32>
    %cst_40 = arith.constant dense<0.000000e+00> : vector<2x8xf32>
    %73 = tpu.matmul %72, %68, %cst_40 {dimension_numbers = #tpu.dot_dimension_numbers<[1], [1], [0], [0], [0, 0, 1, 0], [], []>} : vector<2x8xf32>, vector<8x8xf32>, vector<2x8xf32> -> vector<2x8xf32>
    %cst_41 = arith.constant dense<0.000000e+00> : vector<2x32xf32>
    %74 = tpu.matmul %73, %15, %cst_41 {dimension_numbers = #tpu.dot_dimension_numbers<[1], [1], [0], [0], [0, 0, 1, 0], [], []>} : vector<2x8xf32>, vector<32x8xf32>, vector<2x32xf32> -> vector<2x32xf32>
    %75 = arith.addf %71, %74 : vector<2x32xf32>
    %76 = vector.extract_strided_slice %24 {offsets = [12, 0], sizes = [2, 8], strides = [1, 1]} : vector<32x8xf32> to vector<2x8xf32>
    %cst_42 = arith.constant dense<0.000000e+00> : vector<2x8xf32>
    %77 = tpu.matmul %76, %68, %cst_42 {dimension_numbers = #tpu.dot_dimension_numbers<[1], [1], [0], [0], [0, 0, 1, 0], [], []>} : vector<2x8xf32>, vector<8x8xf32>, vector<2x8xf32> -> vector<2x8xf32>
    %cst_43 = arith.constant dense<0.000000e+00> : vector<2x32xf32>
    %78 = tpu.matmul %77, %17, %cst_43 {dimension_numbers = #tpu.dot_dimension_numbers<[1], [1], [0], [0], [0, 0, 1, 0], [], []>} : vector<2x8xf32>, vector<32x8xf32>, vector<2x32xf32> -> vector<2x32xf32>
    %79 = arith.addf %75, %78 : vector<2x32xf32>
    %80 = vector.extract_strided_slice %24 {offsets = [14, 0], sizes = [2, 8], strides = [1, 1]} : vector<32x8xf32> to vector<2x8xf32>
    %cst_44 = arith.constant dense<0.000000e+00> : vector<2x8xf32>
    %81 = tpu.matmul %80, %68, %cst_44 {dimension_numbers = #tpu.dot_dimension_numbers<[1], [1], [0], [0], [0, 0, 1, 0], [], []>} : vector<2x8xf32>, vector<8x8xf32>, vector<2x8xf32> -> vector<2x8xf32>
    %cst_45 = arith.constant dense<0.000000e+00> : vector<2x32xf32>
    %82 = tpu.matmul %81, %19, %cst_45 {dimension_numbers = #tpu.dot_dimension_numbers<[1], [1], [0], [0], [0, 0, 1, 0], [], []>} : vector<2x8xf32>, vector<32x8xf32>, vector<2x32xf32> -> vector<2x32xf32>
    %83 = arith.addf %79, %82 : vector<2x32xf32>
    %84 = vector.broadcast %11 : vector<1x32xf32> to vector<2x32xf32>
    %85 = arith.addf %83, %84 : vector<2x32xf32>
    %c2_46 = arith.constant 2 : index
    %c0_47 = arith.constant 0 : index
    %86 = vector.load %arg8[%c2_46, %c0_47] : memref<16x32xf32, #tpu.memory_space<vmem>>, vector<2x32xf32>
    tpu.vector_store %arg8[%c2_46, %c0_47], %85 {strides = array<i32>} : memref<16x32xf32, #tpu.memory_space<vmem>>, vector<2x32xf32>,
    %87 = vector.extract_strided_slice %22 {offsets = [0, 16], sizes = [8, 8], strides = [1, 1]} : vector<8x32xf32> to vector<8x8xf32>
    %88 = vector.extract_strided_slice %23 {offsets = [0, 16], sizes = [8, 8], strides = [1, 1]} : vector<8x32xf32> to vector<8x8xf32>
    %cst_48 = arith.constant dense<0.000000e+00> : vector<8x8xf32>
    %89 = tpu.matmul %87, %88, %cst_48 {dimension_numbers = #tpu.dot_dimension_numbers<[1], [1], [0], [0], [0, 0, 1, 0], [], []>} : vector<8x8xf32>, vector<8x8xf32>, vector<8x8xf32> -> vector<8x8xf32>
    %cst_49 = arith.constant dense<0xFF800000> : vector<8xf32>
    %90 = vector.multi_reduction <maximumf>, %89, %cst_49 [1] : vector<8x8xf32> to vector<8xf32>
    %91 = vector.shape_cast %90 : vector<8xf32> to vector<8x1xf32>
    %92 = vector.broadcast %91 : vector<8x1xf32> to vector<8x8xf32>
    %93 = arith.subf %89, %92 : vector<8x8xf32>
    %94 = math.exp %93 : vector<8x8xf32>
    %cst_50 = arith.constant dense<0.000000e+00> : vector<8xf32>
    %95 = vector.multi_reduction <add>, %94, %cst_50 [1] : vector<8x8xf32> to vector<8xf32>
    %96 = vector.shape_cast %95 : vector<8xf32> to vector<8x1xf32>
    %97 = tpu.reciprocal %96 {approx = true} : vector<8x1xf32> -> vector<8x1xf32>
    %98 = vector.broadcast %97 : vector<8x1xf32> to vector<8x8xf32>
    %99 = arith.mulf %94, %98 : vector<8x8xf32>
    %100 = vector.extract_strided_slice %24 {offsets = [16, 0], sizes = [2, 8], strides = [1, 1]} : vector<32x8xf32> to vector<2x8xf32>
    %cst_51 = arith.constant dense<0.000000e+00> : vector<2x8xf32>
    %101 = tpu.matmul %100, %99, %cst_51 {dimension_numbers = #tpu.dot_dimension_numbers<[1], [1], [0], [0], [0, 0, 1, 0], [], []>} : vector<2x8xf32>, vector<8x8xf32>, vector<2x8xf32> -> vector<2x8xf32>
    %cst_52 = arith.constant dense<0.000000e+00> : vector<2x32xf32>
    %102 = tpu.matmul %101, %13, %cst_52 {dimension_numbers = #tpu.dot_dimension_numbers<[1], [1], [0], [0], [0, 0, 1, 0], [], []>} : vector<2x8xf32>, vector<32x8xf32>, vector<2x32xf32> -> vector<2x32xf32>
    %103 = vector.extract_strided_slice %24 {offsets = [18, 0], sizes = [2, 8], strides = [1, 1]} : vector<32x8xf32> to vector<2x8xf32>
    %cst_53 = arith.constant dense<0.000000e+00> : vector<2x8xf32>
    %104 = tpu.matmul %103, %99, %cst_53 {dimension_numbers = #tpu.dot_dimension_numbers<[1], [1], [0], [0], [0, 0, 1, 0], [], []>} : vector<2x8xf32>, vector<8x8xf32>, vector<2x8xf32> -> vector<2x8xf32>
    %cst_54 = arith.constant dense<0.000000e+00> : vector<2x32xf32>
    %105 = tpu.matmul %104, %15, %cst_54 {dimension_numbers = #tpu.dot_dimension_numbers<[1], [1], [0], [0], [0, 0, 1, 0], [], []>} : vector<2x8xf32>, vector<32x8xf32>, vector<2x32xf32> -> vector<2x32xf32>
    %106 = arith.addf %102, %105 : vector<2x32xf32>
    %107 = vector.extract_strided_slice %24 {offsets = [20, 0], sizes = [2, 8], strides = [1, 1]} : vector<32x8xf32> to vector<2x8xf32>
    %cst_55 = arith.constant dense<0.000000e+00> : vector<2x8xf32>
    %108 = tpu.matmul %107, %99, %cst_55 {dimension_numbers = #tpu.dot_dimension_numbers<[1], [1], [0], [0], [0, 0, 1, 0], [], []>} : vector<2x8xf32>, vector<8x8xf32>, vector<2x8xf32> -> vector<2x8xf32>
    %cst_56 = arith.constant dense<0.000000e+00> : vector<2x32xf32>
    %109 = tpu.matmul %108, %17, %cst_56 {dimension_numbers = #tpu.dot_dimension_numbers<[1], [1], [0], [0], [0, 0, 1, 0], [], []>} : vector<2x8xf32>, vector<32x8xf32>, vector<2x32xf32> -> vector<2x32xf32>
    %110 = arith.addf %106, %109 : vector<2x32xf32>
    %111 = vector.extract_strided_slice %24 {offsets = [22, 0], sizes = [2, 8], strides = [1, 1]} : vector<32x8xf32> to vector<2x8xf32>
    %cst_57 = arith.constant dense<0.000000e+00> : vector<2x8xf32>
    %112 = tpu.matmul %111, %99, %cst_57 {dimension_numbers = #tpu.dot_dimension_numbers<[1], [1], [0], [0], [0, 0, 1, 0], [], []>} : vector<2x8xf32>, vector<8x8xf32>, vector<2x8xf32> -> vector<2x8xf32>
    %cst_58 = arith.constant dense<0.000000e+00> : vector<2x32xf32>
    %113 = tpu.matmul %112, %19, %cst_58 {dimension_numbers = #tpu.dot_dimension_numbers<[1], [1], [0], [0], [0, 0, 1, 0], [], []>} : vector<2x8xf32>, vector<32x8xf32>, vector<2x32xf32> -> vector<2x32xf32>
    %114 = arith.addf %110, %113 : vector<2x32xf32>
    %115 = vector.broadcast %11 : vector<1x32xf32> to vector<2x32xf32>
    %116 = arith.addf %114, %115 : vector<2x32xf32>
    %c4 = arith.constant 4 : index
    %c0_59 = arith.constant 0 : index
    %117 = vector.load %arg8[%c4, %c0_59] : memref<16x32xf32, #tpu.memory_space<vmem>>, vector<2x32xf32>
    tpu.vector_store %arg8[%c4, %c0_59], %116 {strides = array<i32>} : memref<16x32xf32, #tpu.memory_space<vmem>>, vector<2x32xf32>,
    %118 = vector.extract_strided_slice %22 {offsets = [0, 24], sizes = [8, 8], strides = [1, 1]} : vector<8x32xf32> to vector<8x8xf32>
    %119 = vector.extract_strided_slice %23 {offsets = [0, 24], sizes = [8, 8], strides = [1, 1]} : vector<8x32xf32> to vector<8x8xf32>
    %cst_60 = arith.constant dense<0.000000e+00> : vector<8x8xf32>
    %120 = tpu.matmul %118, %119, %cst_60 {dimension_numbers = #tpu.dot_dimension_numbers<[1], [1], [0], [0], [0, 0, 1, 0], [], []>} : vector<8x8xf32>, vector<8x8xf32>, vector<8x8xf32> -> vector<8x8xf32>
    %cst_61 = arith.constant dense<0xFF800000> : vector<8xf32>
    %121 = vector.multi_reduction <maximumf>, %120, %cst_61 [1] : vector<8x8xf32> to vector<8xf32>
    %122 = vector.shape_cast %121 : vector<8xf32> to vector<8x1xf32>
    %123 = vector.broadcast %122 : vector<8x1xf32> to vector<8x8xf32>
    %124 = arith.subf %120, %123 : vector<8x8xf32>
    %125 = math.exp %124 : vector<8x8xf32>
    %cst_62 = arith.constant dense<0.000000e+00> : vector<8xf32>
    %126 = vector.multi_reduction <add>, %125, %cst_62 [1] : vector<8x8xf32> to vector<8xf32>
    %127 = vector.shape_cast %126 : vector<8xf32> to vector<8x1xf32>
    %128 = tpu.reciprocal %127 {approx = true} : vector<8x1xf32> -> vector<8x1xf32>
    %129 = vector.broadcast %128 : vector<8x1xf32> to vector<8x8xf32>
    %130 = arith.mulf %125, %129 : vector<8x8xf32>
    %131 = vector.extract_strided_slice %24 {offsets = [24, 0], sizes = [2, 8], strides = [1, 1]} : vector<32x8xf32> to vector<2x8xf32>
    %cst_63 = arith.constant dense<0.000000e+00> : vector<2x8xf32>
    %132 = tpu.matmul %131, %130, %cst_63 {dimension_numbers = #tpu.dot_dimension_numbers<[1], [1], [0], [0], [0, 0, 1, 0], [], []>} : vector<2x8xf32>, vector<8x8xf32>, vector<2x8xf32> -> vector<2x8xf32>
    %cst_64 = arith.constant dense<0.000000e+00> : vector<2x32xf32>
    %133 = tpu.matmul %132, %13, %cst_64 {dimension_numbers = #tpu.dot_dimension_numbers<[1], [1], [0], [0], [0, 0, 1, 0], [], []>} : vector<2x8xf32>, vector<32x8xf32>, vector<2x32xf32> -> vector<2x32xf32>
    %134 = vector.extract_strided_slice %24 {offsets = [26, 0], sizes = [2, 8], strides = [1, 1]} : vector<32x8xf32> to vector<2x8xf32>
    %cst_65 = arith.constant dense<0.000000e+00> : vector<2x8xf32>
    %135 = tpu.matmul %134, %130, %cst_65 {dimension_numbers = #tpu.dot_dimension_numbers<[1], [1], [0], [0], [0, 0, 1, 0], [], []>} : vector<2x8xf32>, vector<8x8xf32>, vector<2x8xf32> -> vector<2x8xf32>
    %cst_66 = arith.constant dense<0.000000e+00> : vector<2x32xf32>
    %136 = tpu.matmul %135, %15, %cst_66 {dimension_numbers = #tpu.dot_dimension_numbers<[1], [1], [0], [0], [0, 0, 1, 0], [], []>} : vector<2x8xf32>, vector<32x8xf32>, vector<2x32xf32> -> vector<2x32xf32>
    %137 = arith.addf %133, %136 : vector<2x32xf32>
    %138 = vector.extract_strided_slice %24 {offsets = [28, 0], sizes = [2, 8], strides = [1, 1]} : vector<32x8xf32> to vector<2x8xf32>
    %cst_67 = arith.constant dense<0.000000e+00> : vector<2x8xf32>
    %139 = tpu.matmul %138, %130, %cst_67 {dimension_numbers = #tpu.dot_dimension_numbers<[1], [1], [0], [0], [0, 0, 1, 0], [], []>} : vector<2x8xf32>, vector<8x8xf32>, vector<2x8xf32> -> vector<2x8xf32>
    %cst_68 = arith.constant dense<0.000000e+00> : vector<2x32xf32>
    %140 = tpu.matmul %139, %17, %cst_68 {dimension_numbers = #tpu.dot_dimension_numbers<[1], [1], [0], [0], [0, 0, 1, 0], [], []>} : vector<2x8xf32>, vector<32x8xf32>, vector<2x32xf32> -> vector<2x32xf32>
    %141 = arith.addf %137, %140 : vector<2x32xf32>
    %142 = vector.extract_strided_slice %24 {offsets = [30, 0], sizes = [2, 8], strides = [1, 1]} : vector<32x8xf32> to vector<2x8xf32>
    %cst_69 = arith.constant dense<0.000000e+00> : vector<2x8xf32>
    %143 = tpu.matmul %142, %130, %cst_69 {dimension_numbers = #tpu.dot_dimension_numbers<[1], [1], [0], [0], [0, 0, 1, 0], [], []>} : vector<2x8xf32>, vector<8x8xf32>, vector<2x8xf32> -> vector<2x8xf32>
    %cst_70 = arith.constant dense<0.000000e+00> : vector<2x32xf32>
    %144 = tpu.matmul %143, %19, %cst_70 {dimension_numbers = #tpu.dot_dimension_numbers<[1], [1], [0], [0], [0, 0, 1, 0], [], []>} : vector<2x8xf32>, vector<32x8xf32>, vector<2x32xf32> -> vector<2x32xf32>
    %145 = arith.addf %141, %144 : vector<2x32xf32>
    %146 = vector.broadcast %11 : vector<1x32xf32> to vector<2x32xf32>
    %147 = arith.addf %145, %146 : vector<2x32xf32>
    %c6 = arith.constant 6 : index
    %c0_71 = arith.constant 0 : index
    %148 = vector.load %arg8[%c6, %c0_71] : memref<16x32xf32, #tpu.memory_space<vmem>>, vector<2x32xf32>
    tpu.vector_store %arg8[%c6, %c0_71], %147 {strides = array<i32>} : memref<16x32xf32, #tpu.memory_space<vmem>>, vector<2x32xf32>,
    %149 = vector.extract_strided_slice %5 {offsets = [8, 0], sizes = [8, 32], strides = [1, 1]} : vector<16x64xf32> to vector<8x32xf32>
    %cst_72 = arith.constant 0.353553385 : f32
    %150 = vector.broadcast %cst_72 : f32 to vector<8x32xf32>
    %151 = arith.mulf %149, %150 : vector<8x32xf32>
    %152 = vector.extract_strided_slice %5 {offsets = [8, 32], sizes = [8, 32], strides = [1, 1]} : vector<16x64xf32> to vector<8x32xf32>
    %153 = vector.extract_strided_slice %10 {offsets = [0, 8], sizes = [32, 8], strides = [1, 1]} : vector<32x16xf32> to vector<32x8xf32>
    %154 = vector.extract_strided_slice %151 {offsets = [0, 0], sizes = [8, 8], strides = [1, 1]} : vector<8x32xf32> to vector<8x8xf32>
    %155 = vector.extract_strided_slice %152 {offsets = [0, 0], sizes = [8, 8], strides = [1, 1]} : vector<8x32xf32> to vector<8x8xf32>
    %cst_73 = arith.constant dense<0.000000e+00> : vector<8x8xf32>
    %156 = tpu.matmul %154, %155, %cst_73 {dimension_numbers = #tpu.dot_dimension_numbers<[1], [1], [0], [0], [0, 0, 1, 0], [], []>} : vector<8x8xf32>, vector<8x8xf32>, vector<8x8xf32> -> vector<8x8xf32>
    %cst_74 = arith.constant dense<0xFF800000> : vector<8xf32>
    %157 = vector.multi_reduction <maximumf>, %156, %cst_74 [1] : vector<8x8xf32> to vector<8xf32>
    %158 = vector.shape_cast %157 : vector<8xf32> to vector<8x1xf32>
    %159 = vector.broadcast %158 : vector<8x1xf32> to vector<8x8xf32>
    %160 = arith.subf %156, %159 : vector<8x8xf32>
    %161 = math.exp %160 : vector<8x8xf32>
    %cst_75 = arith.constant dense<0.000000e+00> : vector<8xf32>
    %162 = vector.multi_reduction <add>, %161, %cst_75 [1] : vector<8x8xf32> to vector<8xf32>
    %163 = vector.shape_cast %162 : vector<8xf32> to vector<8x1xf32>
    %164 = tpu.reciprocal %163 {approx = true} : vector<8x1xf32> -> vector<8x1xf32>
    %165 = vector.broadcast %164 : vector<8x1xf32> to vector<8x8xf32>
    %166 = arith.mulf %161, %165 : vector<8x8xf32>
    %167 = vector.extract_strided_slice %153 {offsets = [0, 0], sizes = [2, 8], strides = [1, 1]} : vector<32x8xf32> to vector<2x8xf32>
    %cst_76 = arith.constant dense<0.000000e+00> : vector<2x8xf32>
    %168 = tpu.matmul %167, %166, %cst_76 {dimension_numbers = #tpu.dot_dimension_numbers<[1], [1], [0], [0], [0, 0, 1, 0], [], []>} : vector<2x8xf32>, vector<8x8xf32>, vector<2x8xf32> -> vector<2x8xf32>
    %cst_77 = arith.constant dense<0.000000e+00> : vector<2x32xf32>
    %169 = tpu.matmul %168, %13, %cst_77 {dimension_numbers = #tpu.dot_dimension_numbers<[1], [1], [0], [0], [0, 0, 1, 0], [], []>} : vector<2x8xf32>, vector<32x8xf32>, vector<2x32xf32> -> vector<2x32xf32>
    %170 = vector.extract_strided_slice %153 {offsets = [2, 0], sizes = [2, 8], strides = [1, 1]} : vector<32x8xf32> to vector<2x8xf32>
    %cst_78 = arith.constant dense<0.000000e+00> : vector<2x8xf32>
    %171 = tpu.matmul %170, %166, %cst_78 {dimension_numbers = #tpu.dot_dimension_numbers<[1], [1], [0], [0], [0, 0, 1, 0], [], []>} : vector<2x8xf32>, vector<8x8xf32>, vector<2x8xf32> -> vector<2x8xf32>
    %cst_79 = arith.constant dense<0.000000e+00> : vector<2x32xf32>
    %172 = tpu.matmul %171, %15, %cst_79 {dimension_numbers = #tpu.dot_dimension_numbers<[1], [1], [0], [0], [0, 0, 1, 0], [], []>} : vector<2x8xf32>, vector<32x8xf32>, vector<2x32xf32> -> vector<2x32xf32>
    %173 = arith.addf %169, %172 : vector<2x32xf32>
    %174 = vector.extract_strided_slice %153 {offsets = [4, 0], sizes = [2, 8], strides = [1, 1]} : vector<32x8xf32> to vector<2x8xf32>
    %cst_80 = arith.constant dense<0.000000e+00> : vector<2x8xf32>
    %175 = tpu.matmul %174, %166, %cst_80 {dimension_numbers = #tpu.dot_dimension_numbers<[1], [1], [0], [0], [0, 0, 1, 0], [], []>} : vector<2x8xf32>, vector<8x8xf32>, vector<2x8xf32> -> vector<2x8xf32>
    %cst_81 = arith.constant dense<0.000000e+00> : vector<2x32xf32>
    %176 = tpu.matmul %175, %17, %cst_81 {dimension_numbers = #tpu.dot_dimension_numbers<[1], [1], [0], [0], [0, 0, 1, 0], [], []>} : vector<2x8xf32>, vector<32x8xf32>, vector<2x32xf32> -> vector<2x32xf32>
    %177 = arith.addf %173, %176 : vector<2x32xf32>
    %178 = vector.extract_strided_slice %153 {offsets = [6, 0], sizes = [2, 8], strides = [1, 1]} : vector<32x8xf32> to vector<2x8xf32>
    %cst_82 = arith.constant dense<0.000000e+00> : vector<2x8xf32>
    %179 = tpu.matmul %178, %166, %cst_82 {dimension_numbers = #tpu.dot_dimension_numbers<[1], [1], [0], [0], [0, 0, 1, 0], [], []>} : vector<2x8xf32>, vector<8x8xf32>, vector<2x8xf32> -> vector<2x8xf32>
    %cst_83 = arith.constant dense<0.000000e+00> : vector<2x32xf32>
    %180 = tpu.matmul %179, %19, %cst_83 {dimension_numbers = #tpu.dot_dimension_numbers<[1], [1], [0], [0], [0, 0, 1, 0], [], []>} : vector<2x8xf32>, vector<32x8xf32>, vector<2x32xf32> -> vector<2x32xf32>
    %181 = arith.addf %177, %180 : vector<2x32xf32>
    %182 = vector.broadcast %11 : vector<1x32xf32> to vector<2x32xf32>
    %183 = arith.addf %181, %182 : vector<2x32xf32>
    %c8 = arith.constant 8 : index
    %c0_84 = arith.constant 0 : index
    %184 = vector.load %arg8[%c8, %c0_84] : memref<16x32xf32, #tpu.memory_space<vmem>>, vector<2x32xf32>
    tpu.vector_store %arg8[%c8, %c0_84], %183 {strides = array<i32>} : memref<16x32xf32, #tpu.memory_space<vmem>>, vector<2x32xf32>,
    %185 = vector.extract_strided_slice %151 {offsets = [0, 8], sizes = [8, 8], strides = [1, 1]} : vector<8x32xf32> to vector<8x8xf32>
    %186 = vector.extract_strided_slice %152 {offsets = [0, 8], sizes = [8, 8], strides = [1, 1]} : vector<8x32xf32> to vector<8x8xf32>
    %cst_85 = arith.constant dense<0.000000e+00> : vector<8x8xf32>
    %187 = tpu.matmul %185, %186, %cst_85 {dimension_numbers = #tpu.dot_dimension_numbers<[1], [1], [0], [0], [0, 0, 1, 0], [], []>} : vector<8x8xf32>, vector<8x8xf32>, vector<8x8xf32> -> vector<8x8xf32>
    %cst_86 = arith.constant dense<0xFF800000> : vector<8xf32>
    %188 = vector.multi_reduction <maximumf>, %187, %cst_86 [1] : vector<8x8xf32> to vector<8xf32>
    %189 = vector.shape_cast %188 : vector<8xf32> to vector<8x1xf32>
    %190 = vector.broadcast %189 : vector<8x1xf32> to vector<8x8xf32>
    %191 = arith.subf %187, %190 : vector<8x8xf32>
    %192 = math.exp %191 : vector<8x8xf32>
    %cst_87 = arith.constant dense<0.000000e+00> : vector<8xf32>
    %193 = vector.multi_reduction <add>, %192, %cst_87 [1] : vector<8x8xf32> to vector<8xf32>
    %194 = vector.shape_cast %193 : vector<8xf32> to vector<8x1xf32>
    %195 = tpu.reciprocal %194 {approx = true} : vector<8x1xf32> -> vector<8x1xf32>
    %196 = vector.broadcast %195 : vector<8x1xf32> to vector<8x8xf32>
    %197 = arith.mulf %192, %196 : vector<8x8xf32>
    %198 = vector.extract_strided_slice %153 {offsets = [8, 0], sizes = [2, 8], strides = [1, 1]} : vector<32x8xf32> to vector<2x8xf32>
    %cst_88 = arith.constant dense<0.000000e+00> : vector<2x8xf32>
    %199 = tpu.matmul %198, %197, %cst_88 {dimension_numbers = #tpu.dot_dimension_numbers<[1], [1], [0], [0], [0, 0, 1, 0], [], []>} : vector<2x8xf32>, vector<8x8xf32>, vector<2x8xf32> -> vector<2x8xf32>
    %cst_89 = arith.constant dense<0.000000e+00> : vector<2x32xf32>
    %200 = tpu.matmul %199, %13, %cst_89 {dimension_numbers = #tpu.dot_dimension_numbers<[1], [1], [0], [0], [0, 0, 1, 0], [], []>} : vector<2x8xf32>, vector<32x8xf32>, vector<2x32xf32> -> vector<2x32xf32>
    %201 = vector.extract_strided_slice %153 {offsets = [10, 0], sizes = [2, 8], strides = [1, 1]} : vector<32x8xf32> to vector<2x8xf32>
    %cst_90 = arith.constant dense<0.000000e+00> : vector<2x8xf32>
    %202 = tpu.matmul %201, %197, %cst_90 {dimension_numbers = #tpu.dot_dimension_numbers<[1], [1], [0], [0], [0, 0, 1, 0], [], []>} : vector<2x8xf32>, vector<8x8xf32>, vector<2x8xf32> -> vector<2x8xf32>
    %cst_91 = arith.constant dense<0.000000e+00> : vector<2x32xf32>
    %203 = tpu.matmul %202, %15, %cst_91 {dimension_numbers = #tpu.dot_dimension_numbers<[1], [1], [0], [0], [0, 0, 1, 0], [], []>} : vector<2x8xf32>, vector<32x8xf32>, vector<2x32xf32> -> vector<2x32xf32>
    %204 = arith.addf %200, %203 : vector<2x32xf32>
    %205 = vector.extract_strided_slice %153 {offsets = [12, 0], sizes = [2, 8], strides = [1, 1]} : vector<32x8xf32> to vector<2x8xf32>
    %cst_92 = arith.constant dense<0.000000e+00> : vector<2x8xf32>
    %206 = tpu.matmul %205, %197, %cst_92 {dimension_numbers = #tpu.dot_dimension_numbers<[1], [1], [0], [0], [0, 0, 1, 0], [], []>} : vector<2x8xf32>, vector<8x8xf32>, vector<2x8xf32> -> vector<2x8xf32>
    %cst_93 = arith.constant dense<0.000000e+00> : vector<2x32xf32>
    %207 = tpu.matmul %206, %17, %cst_93 {dimension_numbers = #tpu.dot_dimension_numbers<[1], [1], [0], [0], [0, 0, 1, 0], [], []>} : vector<2x8xf32>, vector<32x8xf32>, vector<2x32xf32> -> vector<2x32xf32>
    %208 = arith.addf %204, %207 : vector<2x32xf32>
    %209 = vector.extract_strided_slice %153 {offsets = [14, 0], sizes = [2, 8], strides = [1, 1]} : vector<32x8xf32> to vector<2x8xf32>
    %cst_94 = arith.constant dense<0.000000e+00> : vector<2x8xf32>
    %210 = tpu.matmul %209, %197, %cst_94 {dimension_numbers = #tpu.dot_dimension_numbers<[1], [1], [0], [0], [0, 0, 1, 0], [], []>} : vector<2x8xf32>, vector<8x8xf32>, vector<2x8xf32> -> vector<2x8xf32>
    %cst_95 = arith.constant dense<0.000000e+00> : vector<2x32xf32>
    %211 = tpu.matmul %210, %19, %cst_95 {dimension_numbers = #tpu.dot_dimension_numbers<[1], [1], [0], [0], [0, 0, 1, 0], [], []>} : vector<2x8xf32>, vector<32x8xf32>, vector<2x32xf32> -> vector<2x32xf32>
    %212 = arith.addf %208, %211 : vector<2x32xf32>
    %213 = vector.broadcast %11 : vector<1x32xf32> to vector<2x32xf32>
    %214 = arith.addf %212, %213 : vector<2x32xf32>
    %c10 = arith.constant 10 : index
    %c0_96 = arith.constant 0 : index
    %215 = vector.load %arg8[%c10, %c0_96] : memref<16x32xf32, #tpu.memory_space<vmem>>, vector<2x32xf32>
    tpu.vector_store %arg8[%c10, %c0_96], %214 {strides = array<i32>} : memref<16x32xf32, #tpu.memory_space<vmem>>, vector<2x32xf32>,
    %216 = vector.extract_strided_slice %151 {offsets = [0, 16], sizes = [8, 8], strides = [1, 1]} : vector<8x32xf32> to vector<8x8xf32>
    %217 = vector.extract_strided_slice %152 {offsets = [0, 16], sizes = [8, 8], strides = [1, 1]} : vector<8x32xf32> to vector<8x8xf32>
    %cst_97 = arith.constant dense<0.000000e+00> : vector<8x8xf32>
    %218 = tpu.matmul %216, %217, %cst_97 {dimension_numbers = #tpu.dot_dimension_numbers<[1], [1], [0], [0], [0, 0, 1, 0], [], []>} : vector<8x8xf32>, vector<8x8xf32>, vector<8x8xf32> -> vector<8x8xf32>
    %cst_98 = arith.constant dense<0xFF800000> : vector<8xf32>
    %219 = vector.multi_reduction <maximumf>, %218, %cst_98 [1] : vector<8x8xf32> to vector<8xf32>
    %220 = vector.shape_cast %219 : vector<8xf32> to vector<8x1xf32>
    %221 = vector.broadcast %220 : vector<8x1xf32> to vector<8x8xf32>
    %222 = arith.subf %218, %221 : vector<8x8xf32>
    %223 = math.exp %222 : vector<8x8xf32>
    %cst_99 = arith.constant dense<0.000000e+00> : vector<8xf32>
    %224 = vector.multi_reduction <add>, %223, %cst_99 [1] : vector<8x8xf32> to vector<8xf32>
    %225 = vector.shape_cast %224 : vector<8xf32> to vector<8x1xf32>
    %226 = tpu.reciprocal %225 {approx = true} : vector<8x1xf32> -> vector<8x1xf32>
    %227 = vector.broadcast %226 : vector<8x1xf32> to vector<8x8xf32>
    %228 = arith.mulf %223, %227 : vector<8x8xf32>
    %229 = vector.extract_strided_slice %153 {offsets = [16, 0], sizes = [2, 8], strides = [1, 1]} : vector<32x8xf32> to vector<2x8xf32>
    %cst_100 = arith.constant dense<0.000000e+00> : vector<2x8xf32>
    %230 = tpu.matmul %229, %228, %cst_100 {dimension_numbers = #tpu.dot_dimension_numbers<[1], [1], [0], [0], [0, 0, 1, 0], [], []>} : vector<2x8xf32>, vector<8x8xf32>, vector<2x8xf32> -> vector<2x8xf32>
    %cst_101 = arith.constant dense<0.000000e+00> : vector<2x32xf32>
    %231 = tpu.matmul %230, %13, %cst_101 {dimension_numbers = #tpu.dot_dimension_numbers<[1], [1], [0], [0], [0, 0, 1, 0], [], []>} : vector<2x8xf32>, vector<32x8xf32>, vector<2x32xf32> -> vector<2x32xf32>
    %232 = vector.extract_strided_slice %153 {offsets = [18, 0], sizes = [2, 8], strides = [1, 1]} : vector<32x8xf32> to vector<2x8xf32>
    %cst_102 = arith.constant dense<0.000000e+00> : vector<2x8xf32>
    %233 = tpu.matmul %232, %228, %cst_102 {dimension_numbers = #tpu.dot_dimension_numbers<[1], [1], [0], [0], [0, 0, 1, 0], [], []>} : vector<2x8xf32>, vector<8x8xf32>, vector<2x8xf32> -> vector<2x8xf32>
    %cst_103 = arith.constant dense<0.000000e+00> : vector<2x32xf32>
    %234 = tpu.matmul %233, %15, %cst_103 {dimension_numbers = #tpu.dot_dimension_numbers<[1], [1], [0], [0], [0, 0, 1, 0], [], []>} : vector<2x8xf32>, vector<32x8xf32>, vector<2x32xf32> -> vector<2x32xf32>
    %235 = arith.addf %231, %234 : vector<2x32xf32>
    %236 = vector.extract_strided_slice %153 {offsets = [20, 0], sizes = [2, 8], strides = [1, 1]} : vector<32x8xf32> to vector<2x8xf32>
    %cst_104 = arith.constant dense<0.000000e+00> : vector<2x8xf32>
    %237 = tpu.matmul %236, %228, %cst_104 {dimension_numbers = #tpu.dot_dimension_numbers<[1], [1], [0], [0], [0, 0, 1, 0], [], []>} : vector<2x8xf32>, vector<8x8xf32>, vector<2x8xf32> -> vector<2x8xf32>
    %cst_105 = arith.constant dense<0.000000e+00> : vector<2x32xf32>
    %238 = tpu.matmul %237, %17, %cst_105 {dimension_numbers = #tpu.dot_dimension_numbers<[1], [1], [0], [0], [0, 0, 1, 0], [], []>} : vector<2x8xf32>, vector<32x8xf32>, vector<2x32xf32> -> vector<2x32xf32>
    %239 = arith.addf %235, %238 : vector<2x32xf32>
    %240 = vector.extract_strided_slice %153 {offsets = [22, 0], sizes = [2, 8], strides = [1, 1]} : vector<32x8xf32> to vector<2x8xf32>
    %cst_106 = arith.constant dense<0.000000e+00> : vector<2x8xf32>
    %241 = tpu.matmul %240, %228, %cst_106 {dimension_numbers = #tpu.dot_dimension_numbers<[1], [1], [0], [0], [0, 0, 1, 0], [], []>} : vector<2x8xf32>, vector<8x8xf32>, vector<2x8xf32> -> vector<2x8xf32>
    %cst_107 = arith.constant dense<0.000000e+00> : vector<2x32xf32>
    %242 = tpu.matmul %241, %19, %cst_107 {dimension_numbers = #tpu.dot_dimension_numbers<[1], [1], [0], [0], [0, 0, 1, 0], [], []>} : vector<2x8xf32>, vector<32x8xf32>, vector<2x32xf32> -> vector<2x32xf32>
    %243 = arith.addf %239, %242 : vector<2x32xf32>
    %244 = vector.broadcast %11 : vector<1x32xf32> to vector<2x32xf32>
    %245 = arith.addf %243, %244 : vector<2x32xf32>
    %c12 = arith.constant 12 : index
    %c0_108 = arith.constant 0 : index
    %246 = vector.load %arg8[%c12, %c0_108] : memref<16x32xf32, #tpu.memory_space<vmem>>, vector<2x32xf32>
    tpu.vector_store %arg8[%c12, %c0_108], %245 {strides = array<i32>} : memref<16x32xf32, #tpu.memory_space<vmem>>, vector<2x32xf32>,
    %247 = vector.extract_strided_slice %151 {offsets = [0, 24], sizes = [8, 8], strides = [1, 1]} : vector<8x32xf32> to vector<8x8xf32>
    %248 = vector.extract_strided_slice %152 {offsets = [0, 24], sizes = [8, 8], strides = [1, 1]} : vector<8x32xf32> to vector<8x8xf32>
    %cst_109 = arith.constant dense<0.000000e+00> : vector<8x8xf32>
    %249 = tpu.matmul %247, %248, %cst_109 {dimension_numbers = #tpu.dot_dimension_numbers<[1], [1], [0], [0], [0, 0, 1, 0], [], []>} : vector<8x8xf32>, vector<8x8xf32>, vector<8x8xf32> -> vector<8x8xf32>
    %cst_110 = arith.constant dense<0xFF800000> : vector<8xf32>
    %250 = vector.multi_reduction <maximumf>, %249, %cst_110 [1] : vector<8x8xf32> to vector<8xf32>
    %251 = vector.shape_cast %250 : vector<8xf32> to vector<8x1xf32>
    %252 = vector.broadcast %251 : vector<8x1xf32> to vector<8x8xf32>
    %253 = arith.subf %249, %252 : vector<8x8xf32>
    %254 = math.exp %253 : vector<8x8xf32>
    %cst_111 = arith.constant dense<0.000000e+00> : vector<8xf32>
    %255 = vector.multi_reduction <add>, %254, %cst_111 [1] : vector<8x8xf32> to vector<8xf32>
    %256 = vector.shape_cast %255 : vector<8xf32> to vector<8x1xf32>
    %257 = tpu.reciprocal %256 {approx = true} : vector<8x1xf32> -> vector<8x1xf32>
    %258 = vector.broadcast %257 : vector<8x1xf32> to vector<8x8xf32>
    %259 = arith.mulf %254, %258 : vector<8x8xf32>
    %260 = vector.extract_strided_slice %153 {offsets = [24, 0], sizes = [2, 8], strides = [1, 1]} : vector<32x8xf32> to vector<2x8xf32>
    %cst_112 = arith.constant dense<0.000000e+00> : vector<2x8xf32>
    %261 = tpu.matmul %260, %259, %cst_112 {dimension_numbers = #tpu.dot_dimension_numbers<[1], [1], [0], [0], [0, 0, 1, 0], [], []>} : vector<2x8xf32>, vector<8x8xf32>, vector<2x8xf32> -> vector<2x8xf32>
    %cst_113 = arith.constant dense<0.000000e+00> : vector<2x32xf32>
    %262 = tpu.matmul %261, %13, %cst_113 {dimension_numbers = #tpu.dot_dimension_numbers<[1], [1], [0], [0], [0, 0, 1, 0], [], []>} : vector<2x8xf32>, vector<32x8xf32>, vector<2x32xf32> -> vector<2x32xf32>
    %263 = vector.extract_strided_slice %153 {offsets = [26, 0], sizes = [2, 8], strides = [1, 1]} : vector<32x8xf32> to vector<2x8xf32>
    %cst_114 = arith.constant dense<0.000000e+00> : vector<2x8xf32>
    %264 = tpu.matmul %263, %259, %cst_114 {dimension_numbers = #tpu.dot_dimension_numbers<[1], [1], [0], [0], [0, 0, 1, 0], [], []>} : vector<2x8xf32>, vector<8x8xf32>, vector<2x8xf32> -> vector<2x8xf32>
    %cst_115 = arith.constant dense<0.000000e+00> : vector<2x32xf32>
    %265 = tpu.matmul %264, %15, %cst_115 {dimension_numbers = #tpu.dot_dimension_numbers<[1], [1], [0], [0], [0, 0, 1, 0], [], []>} : vector<2x8xf32>, vector<32x8xf32>, vector<2x32xf32> -> vector<2x32xf32>
    %266 = arith.addf %262, %265 : vector<2x32xf32>
    %267 = vector.extract_strided_slice %153 {offsets = [28, 0], sizes = [2, 8], strides = [1, 1]} : vector<32x8xf32> to vector<2x8xf32>
    %cst_116 = arith.constant dense<0.000000e+00> : vector<2x8xf32>
    %268 = tpu.matmul %267, %259, %cst_116 {dimension_numbers = #tpu.dot_dimension_numbers<[1], [1], [0], [0], [0, 0, 1, 0], [], []>} : vector<2x8xf32>, vector<8x8xf32>, vector<2x8xf32> -> vector<2x8xf32>
    %cst_117 = arith.constant dense<0.000000e+00> : vector<2x32xf32>
    %269 = tpu.matmul %268, %17, %cst_117 {dimension_numbers = #tpu.dot_dimension_numbers<[1], [1], [0], [0], [0, 0, 1, 0], [], []>} : vector<2x8xf32>, vector<32x8xf32>, vector<2x32xf32> -> vector<2x32xf32>
    %270 = arith.addf %266, %269 : vector<2x32xf32>
    %271 = vector.extract_strided_slice %153 {offsets = [30, 0], sizes = [2, 8], strides = [1, 1]} : vector<32x8xf32> to vector<2x8xf32>
    %cst_118 = arith.constant dense<0.000000e+00> : vector<2x8xf32>
    %272 = tpu.matmul %271, %259, %cst_118 {dimension_numbers = #tpu.dot_dimension_numbers<[1], [1], [0], [0], [0, 0, 1, 0], [], []>} : vector<2x8xf32>, vector<8x8xf32>, vector<2x8xf32> -> vector<2x8xf32>
    %cst_119 = arith.constant dense<0.000000e+00> : vector<2x32xf32>
    %273 = tpu.matmul %272, %19, %cst_119 {dimension_numbers = #tpu.dot_dimension_numbers<[1], [1], [0], [0], [0, 0, 1, 0], [], []>} : vector<2x8xf32>, vector<32x8xf32>, vector<2x32xf32> -> vector<2x32xf32>
    %274 = arith.addf %270, %273 : vector<2x32xf32>
    %275 = vector.broadcast %11 : vector<1x32xf32> to vector<2x32xf32>
    %276 = arith.addf %274, %275 : vector<2x32xf32>
    %c14 = arith.constant 14 : index
    %c0_120 = arith.constant 0 : index
    %277 = vector.load %arg8[%c14, %c0_120] : memref<16x32xf32, #tpu.memory_space<vmem>>, vector<2x32xf32>
    tpu.vector_store %arg8[%c14, %c0_120], %276 {strides = array<i32>} : memref<16x32xf32, #tpu.memory_space<vmem>>, vector<2x32xf32>,
    return
  }
  func.func @transform_0(%arg0: i32) -> (i32, i32) {
    %c0_i32 = arith.constant 0 : i32
    %c0_i32_0 = arith.constant 0 : i32
    return %arg0, %c0_i32 : i32, i32
  }
  func.func @transform_1(%arg0: i32) -> (i32, i32) {
    %c0_i32 = arith.constant 0 : i32
    %c0_i32_0 = arith.constant 0 : i32
    %c0_i32_1 = arith.constant 0 : i32
    return %c0_i32, %c0_i32_0 : i32, i32
  }
  func.func @transform_2(%arg0: i32) -> (i32, i32) {
    %c0_i32 = arith.constant 0 : i32
    %c0_i32_0 = arith.constant 0 : i32
    %c0_i32_1 = arith.constant 0 : i32
    return %c0_i32, %c0_i32_0 : i32, i32
  }
  func.func @transform_3(%arg0: i32) -> (i32, i32) {
    %c0_i32 = arith.constant 0 : i32
    %c0_i32_0 = arith.constant 0 : i32
    %c0_i32_1 = arith.constant 0 : i32
    return %c0_i32, %c0_i32_0 : i32, i32
  }
  func.func @transform_4(%arg0: i32) -> (i32, i32) {
    %c0_i32 = arith.constant 0 : i32
    %c0_i32_0 = arith.constant 0 : i32
    %c0_i32_1 = arith.constant 0 : i32
    return %c0_i32, %c0_i32_0 : i32, i32
  }
  func.func @transform_5(%arg0: i32) -> (i32, i32, i32) {
    %c0_i32 = arith.constant 0 : i32
    %c0_i32_0 = arith.constant 0 : i32
    %c0_i32_1 = arith.constant 0 : i32
    %c0_i32_2 = arith.constant 0 : i32
    return %c0_i32, %c0_i32_0, %c0_i32_1 : i32, i32, i32
  }
  func.func @transform_6(%arg0: i32) -> (i32, i32) {
    %c0_i32 = arith.constant 0 : i32
    %c0_i32_0 = arith.constant 0 : i32
    %c0_i32_1 = arith.constant 0 : i32
    return %c0_i32, %c0_i32_0 : i32, i32
  }
  func.func @transform_7(%arg0: i32) -> (i32, i32) {
    %c0_i32 = arith.constant 0 : i32
    %c0_i32_0 = arith.constant 0 : i32
    return %arg0, %c0_i32 : i32, i32
  }
}

</mosaic_0001>

<bundles_post_ra>
// kernel: tpu_custom_call.1
= control target key start
LH: loop header
LB: loop body
LE: loop exit
PB: predicated region body
PF: predicated region fallthrough
CT: control target
= control target key end

     0   :  { %vm44_vm0 = vcmask 261120   ;;  %s8180_s0 = inlined_call_operand.vmem [shape: f32[16,32], index: 0, kind: input, shape index: {}]   ;;  %s8181_s1 = inlined_call_operand.vmem [shape: f32[64,32], index: 1, kind: input, shape index: {}]   ;;  %s8182_s2 = inlined_call_operand.vmem [shape: f32[1,64], index: 2, kind: input, shape index: {}]   ;;  %s8183_s3 = inlined_call_operand.vmem [shape: f32[32,32], index: 3, kind: input, shape index: {}]   ;;  %s8184_s4 = inlined_call_operand.vmem [shape: f32[32,1], index: 4, kind: input, shape index: {}]   ;;  %s8185_s5 = inlined_call_operand.vmem [shape: f32[4,32,8], index: 5, kind: input, shape index: {}]   ;;  %s8186_s6 = inlined_call_operand.vmem [shape: f32[1,32], index: 6, kind: input, shape index: {}]   ;;  %s8187_s7 = inlined_call_operand.hbm [shape: f32[16,32], index: 7, kind: output, shape index: {}]  }
   0x1   :  { %v36_v0 = vld [vmem:[%s8181_s1 + $0x38] sm:$0xff]  ;;  %v35_v1 = vld [vmem:[%s8181_s1 + $0x30] sm:$0xff]  ;;  %v27_v2 = vld [vmem:[%s8180_s0] sm:$0xff] }
   0x2   :  { %6351 = vmatprep.subr.msk.mxu0 %vm44_vm0, %v36_v0  ;;  %6367 = vmatprep.mubr.msk.f32.mxu0 %vm44_vm0, %v27_v2  ;;  %v28_v3 = vld [vmem:[%s8180_s0 + $0x8] sm:$0xff] }
   0x3   :  { %6352 = vmatpush3.xpose.msk.msra.mxu0 %vm44_vm0, %v36_v0 }
   0x4   :  { %6353 = vmatprep.subr.msk.mxu0 %vm44_vm0, %v35_v1 }
   0x5   :  { %12 = vsyncpa [#allocation3], 0  ;;  %v34_v4 = vld [vmem:[%s8181_s1 + $0x28] sm:$0xff]  ;;  %6370 = vmatprep.subr.msk.mxu1 %vm44_vm0, %v28_v3  ;;  %v33_v5 = vld [vmem:[%s8181_s1 + $0x20] sm:$0xff]  ;;  %v7018_v13 = vmov 0.0   ;;  %vm7019_vm1 = vmmov 0  }
   0x6   :  { %6371 = vmatpush3.xpose.msk.msra.mxu1 %vm44_vm0, %v28_v3  ;;  %v32_v6 = vld [vmem:[%s8181_s1 + $0x18] sm:$0xff]  ;;  %v31_v7 = vld [vmem:[%s8181_s1 + $0x10] sm:$0xff]  ;;  %v30_v8 = vld [vmem:[%s8181_s1 + $0x8] sm:$0xff]  ;;  %vm299_vm2 = vcmask 64512   ;;  %v7021_v29 = vmov 0   ;;  %s7022_s30 = smov 88  }
   0x7   :  { %6354 = vmatpush3.xpose.msk.msra.mxu0 %vm44_vm0, %v35_v1  ;;  %6372 = vmatprep.subr.msk.mxu1 %vm44_vm0, %v27_v2  ;;  %v29_v9 = vld [vmem:[%s8181_s1] sm:$0xff]  ;;  %v151_v11 = vld [vmem:[%s8183_s3 + $0x8] sm:$0xff]  ;;  %v152_v12 = vld [vmem:[%s8183_s3 + $0x10] sm:$0xff]  ;;  %s7023_s8 = smov 120   ;;  %vm1030_vm3 = vcmask 254976   ;;  %s7024_s18 = smov 80  }
   0x8   :  { %6355 = vmatprep.subr.msk.mxu0 %vm44_vm0, %v34_v4  ;;  %v150_v10 = vld [vmem:[%s8183_s3] sm:$0xff]  ;;  %v153_v14 = vld [vmem:[%s8183_s3 + $0x18] sm:$0xff]  ;;  %s7020_s3 = smov 96   ;;  %6945 = vset.pattern.permute.xlu1 %v7021_v29  ;;  %v7189_v37 = vld [vmem:[%s8185_s5 + $0x10] sm:$0xff]  ;;  %s7025_s19 = smov 112  }
   0x9   :  { %6374 = vmatprep.mubr.msk.f32.mxu1 %vm44_vm0, %v150_v10  ;;  %v5825_v15 = vld [vmem:[%s8182_s2] ss:$0 sm:$0xff]  ;;  %6946 = vset.pattern.permute.xlu0 %v7021_v29  ;;  %v7181_v36 = vld [vmem:[%s8185_s5 + $0x18] sm:$0xff]  ;;  %v7197_v38 = vld [vmem:[%s8185_s5 + $0x8] sm:$0xff]  ;;  %s7026_s24 = smov 104   ;;  %s7027_s25 = smov 72  }
   0xa   :  { %6373 = vmatpush3.xpose.msk.msra.mxu1 %vm44_vm0, %v27_v2  ;;  %v154_v35 = vld [vmem:[%s8184_s4] sm:$0xff]  ;;  %v7224_v46 = vld [vmem:[%s8185_s5 + $0x38] sm:$0xff]  ;;  %v7237_v47 = vld [vmem:[%s8185_s5 + $0x30] sm:$0xff] }
   0xb   :  { %6356 = vmatpush3.xpose.msk.msra.mxu0 %vm44_vm0, %v34_v4  ;;  %6380 = vmatprep.subr.mxu1 %v7018_v13  ;;  %v7205_v39 = vld [vmem:[%s8185_s5] sm:$0xff]  ;;  %v7245_v48 = vld [vmem:[%s8185_s5 + $0x28] sm:$0xff]  ;;  %v7267_v54 = vld [vmem:[%s8185_s5 + $0x78] sm:$0xff] }
   0xc   :  { %6357 = vmatprep.subr.msk.mxu0 %vm44_vm0, %v33_v5  ;;  %v7253_v49 = vld [vmem:[%s8185_s5 + $0x20] sm:$0xff]  ;;  %v7283_v57 = vld [vmem:[%s8185_s5 + $0x58] sm:$0xff]  ;;  %v7289_v58 = vld [vmem:[%s8185_s5 + $0x70] sm:$0xff] }
   0xd   :  { %6375 = vmatmul.mubr.msk.f32.vlgmr.msra.gmra.mxu1 %vm44_vm0, %v151_v11  ;;  %v7306_v59 = vld [vmem:[%s8185_s5 + $0x50] sm:$0xff]  ;;  %v7312_v60 = vld [vmem:[%s8185_s5 + $0x68] sm:$0xff]  ;;  %v7330_v62 = vld [vmem:[%s8185_s5 + $0x60] sm:$0xff] }
   0xe   :  { %6377 = vmatprep.mubr.msk.f32.mxu1 %vm44_vm0, %v152_v12  ;;  %v7323_v61 = vld [vmem:[%s8185_s5 + $0x48] sm:$0xff]  ;;  %v7339_v63 = vld [vmem:[%s8185_s5 + $0x40] sm:$0xff] }
   0xf   :  { %6358 = vmatpush3.xpose.msk.msra.mxu0 %vm44_vm0, %v33_v5 }
  0x10   :  { %6359 = vmatprep.subr.msk.mxu0 %vm44_vm0, %v32_v6 }
  0x11   :  { %6378 = vmatmul.mubr.msk.f32.gmra.mxu1 %vm44_vm0, %v153_v14 }
  0x12   :  { %6382 = vmatprep.mubr.msk.f32.mxu1 %vm7019_vm1, %v7018_v13 }
  0x13   :  { %6360 = vmatpush3.xpose.msk.msra.mxu0 %vm44_vm0, %v32_v6 }
  0x14   :  { %6361 = vmatprep.subr.msk.mxu0 %vm44_vm0, %v31_v7 }
  0x17   :  { %6362 = vmatpush3.xpose.msk.msra.mxu0 %vm44_vm0, %v31_v7 }
  0x18   :  { %6363 = vmatprep.subr.msk.mxu0 %vm44_vm0, %v30_v8 }
  0x1b   :  { %6364 = vmatpush3.xpose.msk.msra.mxu0 %vm44_vm0, %v30_v8 }
  0x1c   :  { %6365 = vmatprep.subr.msk.mxu0 %vm44_vm0, %v29_v9 }
  0x1f   :  { %6366 = vmatpush3.xpose.msk.msra.mxu0 %vm44_vm0, %v29_v9 }
  0x20   :  { %6406 = vmatprep.subr.mxu0 %v7018_v13 }
  0x22   :  { %6368 = vmatmul.mubr.msk.f32.vlgmr.msra.gmra.mxu0 %vm44_vm0, %v28_v3 }
  0x23   :  { %6414 = vmatprep.mubr.msk.f32.mxu0 %vm7019_vm1, %v7018_v13  ;;  %6407 = vmatpush3.xpose.msk.msra.mxu0 %vm299_vm2, %v7181_v36 }
  0x24   :  { %6408 = vmatprep.subr.mxu0 %v7018_v13 }
  0x27   :  { %6409 = vmatpush3.xpose.msk.msra.mxu0 %vm299_vm2, %v7189_v37 }
  0x28   :  { %6410 = vmatprep.subr.mxu0 %v7018_v13 }
  0x2b   :  { %6411 = vmatpush3.xpose.msk.msra.mxu0 %vm299_vm2, %v7197_v38 }
  0x2c   :  { %6412 = vmatprep.subr.mxu0 %v7018_v13 }
  0x2f   :  { %6413 = vmatpush3.xpose.msk.msra.mxu0 %vm299_vm2, %v7205_v39 }
  0x30   :  { %6433 = vmatprep.subr.mxu0 %v7018_v13 }
  0xcd   :  { %v7163_v22 = vpop.f32.mrf.mxu1 }
  0xcf   :  { %v256_v23 = vpop.f32.mrf.mxu1 }
  0xd1   :  { %v7165_v24 = vpop.f32.mrf.mxu1 }
  0xd3   :  { %v7167_v25 = vpop.f32.mrf.mxu1 }
  0xe2   :  { %v6369_v16 = vpop.f32.mrf.mxu0 }
  0xe3   :  { %v7148_v17 = vadd.f32 %v6369_v16, %v5825_v15  ;;  %v7358_v16 = vld [vmem:[%s8186_s6] ss:$0 sm:$0xff] }
  0xe4   :  { %v141_v18 = vpop.f32.mrf.mxu0 }
  0xe5   :  { %v7150_v19 = vadd.f32 %v5825_v15, %v141_v18 }
  0xe7   :  { %297 = vrot.lane.b32.xlu0 %v7150_v19, %s7020_s3  ;;  %v7156_v21 = vmul.f32 0.35355338, %v7150_v19 }
 0x159   :  { %v298_v20 = vpop.permute.xlu0 %297 }
 0x15a   :  { %6381 = vmatpush3.xpose.msk.msra.mxu1 %vm299_vm2, %v298_v20 }
 0x15b   :  { %6385 = vmatprep.subr.mxu1 %v7018_v13 }
 0x15d   :  { %6383 = vmatmul.mubr.msk.f32.vlgmr.msra.gmra.mxu1 %vm299_vm2, %v7156_v21 }
 0x15e   :  { %6387 = vmatprep.mubr.msk.f32.mxu1 %vm7019_vm1, %v7018_v13 }
 0x21d   :  { %v371_v26 = vpop.f32.mrf.mxu1 }
 0x21e   :  { %v375_v27 = vsel %vm299_vm2, %v371_v26, -inf }
 0x21f   :  { %376 = vmax.xlane.f32.xlu0 %v375_v27  ;;  %v6384_v28 = vpop.f32.mrf.mxu1 }
 0x2a8   :  { %v377_v30 = vpop.xlane.xlu0 %376 }
 0x2a9   :  { %v378_v31 = vsub.f32 %v371_v26, %v377_v30 }
 0x2ab   :  { %v379_v32 = vmul.f32 1.442695, %v378_v31 }
 0x2ad   :  { %6947 = vpow2.f32 %v379_v32 }
 0x2ba   :  { %v6948_v33 = vpop.eup %6947 }
 0x2bb   :  { %v381_v34 = vsel %vm299_vm2, %v6948_v33, 0.0 }
 0x2bc   :  { %382 = vadd.xlane.f32.xlu1 %v381_v34  ;;  %v155_v34 = vld [vmem:[%s8184_s4 + $0x8] sm:$0xff] }
 0x2cd   :  { %160 = vperm.xlu1 %6945, %v154_v35  }
 0x2d1   :  { %1034 = vrot.lane.b32.xlu1 %v7150_v19, %s7022_s30 }
 0x2d5   :  { %1032 = vrot.lane.b32.xlu1 %v7156_v21, %s7023_s8 }
 0x345   :  { %v383_v40 = vpop.xlane.xlu1 %382 }
 0x346   :  { %6949 = vrcp.f32 %v383_v40 }
 0x349   :  { %v161_v42 = vpop.permute.xlu1 %160 }
 0x34a   :  { %v7211_v44 = vadd.f32 %v256_v23, %v161_v42 }
 0x34c   :  { %v462_v45 = vrot.slane %v7211_v44, 2  ;;  %v864_v52 = vrot.slane %v7211_v44, 6  ;;  %v705_v56 = vrot.slane %v7211_v44, 4 }
 0x34d   :  { %v1035_v4 = vpop.permute.xlu1 %1034 }
 0x351   :  { %v1033_v10 = vpop.permute.xlu1 %1032 }
 0x353   :  { %v6950_v41 = vpop.eup %6949 }
 0x354   :  { %v385_v43 = vmul.f32 %v6950_v41, %v6948_v33 }
 0x356   :  { %6386 = vmatpush3.xpose.msk.msra.mxu1 %vm299_vm2, %v385_v43 }
 0x357   :  { %6390 = vmatprep.subr.mxu1 %v7018_v13 }
 0x359   :  { %6388 = vmatmul.mubr.msk.f32.vlgmr.msra.gmra.mxu1 %vm299_vm2, %v7211_v44 }
 0x35a   :  { %6391 = vmatpush3.xpose.msk.msra.mxu1 %vm299_vm2, %v385_v43  ;;  %6392 = vmatprep.mubr.msk.f32.mxu1 %vm7019_vm1, %v7018_v13 }
 0x35b   :  { %6395 = vmatprep.subr.mxu1 %v7018_v13 }
 0x35d   :  { %6393 = vmatmul.mubr.msk.f32.vlgmr.msra.gmra.mxu1 %vm299_vm2, %v462_v45 }
 0x35e   :  { %6396 = vmatpush3.xpose.msk.msra.mxu1 %vm299_vm2, %v7224_v46  ;;  %6403 = vmatprep.mubr.msk.f32.mxu1 %vm7019_vm1, %v7018_v13 }
 0x35f   :  { %6397 = vmatprep.subr.mxu1 %v7018_v13 }
 0x362   :  { %6398 = vmatpush3.xpose.msk.msra.mxu1 %vm299_vm2, %v7237_v47 }
 0x363   :  { %6399 = vmatprep.subr.mxu1 %v7018_v13 }
 0x366   :  { %6400 = vmatpush3.xpose.msk.msra.mxu1 %vm299_vm2, %v7245_v48 }
 0x367   :  { %6401 = vmatprep.subr.mxu1 %v7018_v13 }
 0x36a   :  { %6402 = vmatpush3.xpose.msk.msra.mxu1 %vm299_vm2, %v7253_v49 }
 0x36b   :  { %6417 = vmatprep.subr.mxu1 %v7018_v13 }
 0x419   :  { %v458_v50 = vpop.f32.mrf.mxu1 }
 0x41a   :  { %6415 = vmatmul.mubr.msk.f32.vlgmr.msra.gmra.mxu0 %vm299_vm2, %v458_v50 }
 0x41b   :  { %6434 = vmatpush3.xpose.msk.msra.mxu0 %vm299_vm2, %v385_v43  ;;  %v6389_v51 = vpop.f32.mrf.mxu1  ;;  %6435 = vmatprep.mubr.msk.f32.mxu0 %vm7019_vm1, %v7018_v13 }
 0x41c   :  { %6438 = vmatprep.subr.mxu0 %v7018_v13 }
 0x41d   :  { %v531_v53 = vpop.f32.mrf.mxu1 }
 0x41e   :  { %6404 = vmatmul.mubr.msk.f32.vlgmr.msra.gmra.mxu1 %vm299_vm2, %v531_v53  ;;  %6436 = vmatmul.mubr.msk.f32.vlgmr.msra.gmra.mxu0 %vm299_vm2, %v864_v52 }
 0x41f   :  { %6418 = vmatpush3.xpose.msk.msra.mxu1 %vm299_vm2, %v385_v43  ;;  %v6394_v55 = vpop.f32.mrf.mxu1  ;;  %6419 = vmatprep.mubr.msk.f32.mxu1 %vm7019_vm1, %v7018_v13 }
 0x420   :  { %6439 = vmatpush3.xpose.msk.msra.mxu0 %vm299_vm2, %v7267_v54  ;;  %6422 = vmatprep.subr.mxu1 %v7018_v13 }
 0x421   :  { %6440 = vmatprep.subr.mxu0 %v7018_v13  ;;  %6446 = vmatprep.mubr.msk.f32.mxu0 %vm7019_vm1, %v7018_v13 }
 0x422   :  { %6420 = vmatmul.mubr.msk.f32.vlgmr.msra.gmra.mxu1 %vm299_vm2, %v705_v56 }
 0x423   :  { %6423 = vmatpush3.xpose.msk.msra.mxu1 %vm299_vm2, %v7283_v57  ;;  %6430 = vmatprep.mubr.msk.f32.mxu1 %vm7019_vm1, %v7018_v13 }
 0x424   :  { %6441 = vmatpush3.xpose.msk.msra.mxu0 %vm299_vm2, %v7289_v58  ;;  %6424 = vmatprep.subr.mxu1 %v7018_v13 }
 0x425   :  { %6442 = vmatprep.subr.mxu0 %v7018_v13 }
 0x427   :  { %6425 = vmatpush3.xpose.msk.msra.mxu1 %vm299_vm2, %v7306_v59 }
 0x428   :  { %6443 = vmatpush3.xpose.msk.msra.mxu0 %vm299_vm2, %v7312_v60  ;;  %6426 = vmatprep.subr.mxu1 %v7018_v13 }
 0x429   :  { %6444 = vmatprep.subr.mxu0 %v7018_v13 }
 0x42b   :  { %6427 = vmatpush3.xpose.msk.msra.mxu1 %vm299_vm2, %v7323_v61 }
 0x42c   :  { %6428 = vmatprep.subr.mxu1 %v7018_v13  ;;  %6445 = vmatpush3.xpose.msk.msra.mxu0 %vm299_vm2, %v7330_v62 }
 0x42d   :  { %6459 = vmatprep.subr.mxu0 %v7018_v13 }
 0x42f   :  { %6429 = vmatpush3.xpose.msk.msra.mxu1 %vm299_vm2, %v7339_v63 }
 0x430   :  { %6449 = vmatprep.subr.mxu1 %v7018_v13 }
 0x4da   :  { %v701_v0 = vpop.f32.mrf.mxu0 }
 0x4dc   :  { %v6416_v1 = vpop.f32.mrf.mxu0 }
 0x4de   :  { %v616_v2 = vpop.f32.mrf.mxu1  ;;  %v933_v3 = vpop.f32.mrf.mxu0 }
 0x4df   :  { %v702_v5 = vadd.f32 %v701_v0, %v616_v2  ;;  %6447 = vmatmul.mubr.msk.f32.vlgmr.msra.gmra.mxu0 %vm299_vm2, %v933_v3 }
 0x4e0   :  { %v6405_v6 = vpop.f32.mrf.mxu1  ;;  %v6437_v7 = vpop.f32.mrf.mxu0  ;;  %6461 = vmatprep.mubr.msk.f32.mxu0 %vm7019_vm1, %v7018_v13 }
 0x4e2   :  { %v774_v8 = vpop.f32.mrf.mxu1 }
 0x4e3   :  { %6431 = vmatmul.mubr.msk.f32.vlgmr.msra.gmra.mxu1 %vm299_vm2, %v774_v8 }
 0x4e4   :  { %6450 = vmatpush3.xpose.msk.msra.mxu1 %vm299_vm2, %v1035_v4  ;;  %v6421_v9 = vpop.f32.mrf.mxu1  ;;  %6451 = vmatprep.mubr.msk.f32.mxu1 %vm7019_vm1, %v7018_v13 }
 0x4e5   :  { %6454 = vmatprep.subr.mxu1 %v7018_v13 }
 0x4e7   :  { %6452 = vmatmul.mubr.msk.f32.vlgmr.msra.gmra.mxu1 %vm299_vm2, %v1033_v10 }
 0x4e8   :  { %6456 = vmatprep.mubr.msk.f32.mxu1 %vm7019_vm1, %v7018_v13 }
 0x59f   :  { %v1018_v11 = vpop.f32.mrf.mxu0 }
 0x5a1   :  { %v6448_v12 = vpop.f32.mrf.mxu0 }
 0x5a3   :  { %v859_v14 = vpop.f32.mrf.mxu1 }
 0x5a4   :  { %v863_v15 = vadd.f32 %v859_v14, %v702_v5 }
 0x5a5   :  { %v6432_v18 = vpop.f32.mrf.mxu1 }
 0x5a6   :  { %v1022_v20 = vadd.f32 %v1018_v11, %v863_v15 }
 0x5a7   :  { %v1106_v23 = vpop.f32.mrf.mxu1 }
 0x5a8   :  { %v1029_v26 = vadd.f32 %v7358_v16, %v1022_v20  ;;  %v1110_v27 = vsel %vm299_vm2, %v1106_v23, -inf }
 0x5a9   :  { %1111 = vmax.xlane.f32.xlu1 %v1110_v27  ;;  %v6453_v28 = vpop.f32.mrf.mxu1 }
 0x5aa   :  { %1031 = vst.msk [vmem:[#allocation2] sm:$0x3] %vm1030_vm3, %v1029_v26 }
 0x5ba   :  { %1714 = vrot.lane.b32.xlu1 %v7150_v19, %s7024_s18 }
 0x5be   :  { %1712 = vrot.lane.b32.xlu1 %v7156_v21, %s7025_s19 }
 0x632   :  { %v1112_v29 = vpop.xlane.xlu1 %1111 }
 0x633   :  { %v1113_v30 = vsub.f32 %v1106_v23, %v1112_v29 }
 0x635   :  { %v1114_v31 = vmul.f32 1.442695, %v1113_v30 }
 0x636   :  { %v1715_v4 = vpop.permute.xlu1 %1714 }
 0x637   :  { %6951 = vpow2.f32 %v1114_v31  ;;  %v156_v31 = vld [vmem:[%s8184_s4 + $0x10] sm:$0xff] }
 0x63a   :  { %v1713_v10 = vpop.permute.xlu1 %1712 }
 0x644   :  { %v6952_v32 = vpop.eup %6951 }
 0x645   :  { %v1116_v33 = vsel %vm299_vm2, %v6952_v32, 0.0 }
 0x646   :  { %1117 = vadd.xlane.f32.xlu0 %v1116_v33 }
 0x65c   :  { %165 = vperm.xlu0 %6946, %v155_v34  }
 0x6cf   :  { %v1118_v35 = vpop.xlane.xlu0 %1117 }
 0x6d0   :  { %6953 = vrcp.f32 %v1118_v35 }
 0x6d7   :  { %v166_v40 = vpop.permute.xlu0 %165 }
 0x6d8   :  { %v7372_v42 = vadd.f32 %v7163_v22, %v166_v40 }
 0x6da   :  { %v1197_v50 = vrot.slane %v7372_v42, 2  ;;  %v1416_v0 = vrot.slane %v7372_v42, 4  ;;  %v1563_v1 = vrot.slane %v7372_v42, 6 }
 0x6dd   :  { %v6954_v41 = vpop.eup %6953 }
 0x6de   :  { %v1120_v43 = vmul.f32 %v6954_v41, %v6952_v32 }
 0x6e0   :  { %6455 = vmatpush3.xpose.msk.msra.mxu1 %vm299_vm2, %v1120_v43  ;;  %6460 = vmatpush3.xpose.msk.msra.mxu0 %vm299_vm2, %v1120_v43 }
 0x6e1   :  { %6464 = vmatprep.subr.mxu1 %v7018_v13  ;;  %6475 = vmatprep.subr.mxu0 %v7018_v13 }
 0x6e3   :  { %6457 = vmatmul.mubr.msk.f32.vlgmr.msra.gmra.mxu1 %vm299_vm2, %v7372_v42  ;;  %6462 = vmatmul.mubr.msk.f32.vlgmr.msra.gmra.mxu0 %vm299_vm2, %v1197_v50 }
 0x6e4   :  { %6465 = vmatpush3.xpose.msk.msra.mxu1 %vm299_vm2, %v7224_v46  ;;  %6476 = vmatpush3.xpose.msk.msra.mxu0 %vm299_vm2, %v7181_v36 }
 0x6e5   :  { %6466 = vmatprep.subr.mxu1 %v7018_v13  ;;  %6477 = vmatprep.subr.mxu0 %v7018_v13 }
 0x6e6   :  { %6472 = vmatprep.mubr.msk.f32.mxu1 %vm7019_vm1, %v7018_v13  ;;  %6483 = vmatprep.mubr.msk.f32.mxu0 %vm7019_vm1, %v7018_v13 }
 0x6e8   :  { %6467 = vmatpush3.xpose.msk.msra.mxu1 %vm299_vm2, %v7237_v47  ;;  %6478 = vmatpush3.xpose.msk.msra.mxu0 %vm299_vm2, %v7189_v37 }
 0x6e9   :  { %6468 = vmatprep.subr.mxu1 %v7018_v13  ;;  %6479 = vmatprep.subr.mxu0 %v7018_v13 }
 0x6ec   :  { %6469 = vmatpush3.xpose.msk.msra.mxu1 %vm299_vm2, %v7245_v48  ;;  %6480 = vmatpush3.xpose.msk.msra.mxu0 %vm299_vm2, %v7197_v38 }
 0x6ed   :  { %6470 = vmatprep.subr.mxu1 %v7018_v13  ;;  %6481 = vmatprep.subr.mxu0 %v7018_v13 }
 0x6f0   :  { %6471 = vmatpush3.xpose.msk.msra.mxu1 %vm299_vm2, %v7253_v49  ;;  %6482 = vmatpush3.xpose.msk.msra.mxu0 %vm299_vm2, %v7205_v39 }
 0x6f1   :  { %6486 = vmatprep.subr.mxu1 %v7018_v13  ;;  %6491 = vmatprep.subr.mxu0 %v7018_v13 }
 0x7a3   :  { %v1193_v22 = vpop.f32.mrf.mxu1  ;;  %v1266_v51 = vpop.f32.mrf.mxu0 }
 0x7a4   :  { %6473 = vmatmul.mubr.msk.f32.vlgmr.msra.gmra.mxu1 %vm299_vm2, %v1266_v51  ;;  %6484 = vmatmul.mubr.msk.f32.vlgmr.msra.gmra.mxu0 %vm299_vm2, %v1193_v22 }
 0x7a5   :  { %6487 = vmatpush3.xpose.msk.msra.mxu1 %vm299_vm2, %v1120_v43  ;;  %v6458_v53 = vpop.f32.mrf.mxu1  ;;  %v6463_v55 = vpop.f32.mrf.mxu0  ;;  %6488 = vmatprep.mubr.msk.f32.mxu1 %vm7019_vm1, %v7018_v13 }
 0x7a6   :  { %6502 = vmatprep.subr.mxu1 %v7018_v13  ;;  %6492 = vmatpush3.xpose.msk.msra.mxu0 %vm299_vm2, %v7283_v57 }
 0x7a7   :  { %6493 = vmatprep.subr.mxu0 %v7018_v13  ;;  %6499 = vmatprep.mubr.msk.f32.mxu0 %vm7019_vm1, %v7018_v13 }
 0x7a8   :  { %6489 = vmatmul.mubr.msk.f32.vlgmr.msra.gmra.mxu1 %vm299_vm2, %v1416_v0 }
 0x7a9   :  { %6503 = vmatpush3.xpose.msk.msra.mxu1 %vm299_vm2, %v1120_v43  ;;  %6504 = vmatprep.mubr.msk.f32.mxu1 %vm7019_vm1, %v7018_v13 }
 0x7aa   :  { %6494 = vmatpush3.xpose.msk.msra.mxu0 %vm299_vm2, %v7306_v59  ;;  %6507 = vmatprep.subr.mxu1 %v7018_v13 }
 0x7ab   :  { %6495 = vmatprep.subr.mxu0 %v7018_v13 }
 0x7ac   :  { %6505 = vmatmul.mubr.msk.f32.vlgmr.msra.gmra.mxu1 %vm299_vm2, %v1563_v1 }
 0x7ad   :  { %6508 = vmatpush3.xpose.msk.msra.mxu1 %vm299_vm2, %v7267_v54  ;;  %6515 = vmatprep.mubr.msk.f32.mxu1 %vm7019_vm1, %v7018_v13 }
 0x7ae   :  { %6496 = vmatpush3.xpose.msk.msra.mxu0 %vm299_vm2, %v7323_v61  ;;  %6509 = vmatprep.subr.mxu1 %v7018_v13 }
 0x7af   :  { %6497 = vmatprep.subr.mxu0 %v7018_v13 }
 0x7b1   :  { %6510 = vmatpush3.xpose.msk.msra.mxu1 %vm299_vm2, %v7289_v58 }
 0x7b2   :  { %6498 = vmatpush3.xpose.msk.msra.mxu0 %vm299_vm2, %v7339_v63  ;;  %6511 = vmatprep.subr.mxu1 %v7018_v13 }
 0x7b3   :  { %6518 = vmatprep.subr.mxu0 %v7018_v13 }
 0x7b5   :  { %6512 = vmatpush3.xpose.msk.msra.mxu1 %vm299_vm2, %v7312_v60 }
 0x7b6   :  { %6513 = vmatprep.subr.mxu1 %v7018_v13 }
 0x7b9   :  { %6514 = vmatpush3.xpose.msk.msra.mxu1 %vm299_vm2, %v7330_v62 }
 0x7ba   :  { %6528 = vmatprep.subr.mxu1 %v7018_v13 }
 0x864   :  { %v1339_v2 = vpop.f32.mrf.mxu1  ;;  %v1412_v3 = vpop.f32.mrf.mxu0 }
 0x865   :  { %v1413_v5 = vadd.f32 %v1412_v3, %v1339_v2 }
 0x866   :  { %v6474_v6 = vpop.f32.mrf.mxu1  ;;  %v6485_v7 = vpop.f32.mrf.mxu0 }
 0x868   :  { %v1485_v8 = vpop.f32.mrf.mxu1 }
 0x869   :  { %6500 = vmatmul.mubr.msk.f32.vlgmr.msra.gmra.mxu0 %vm299_vm2, %v1485_v8 }
 0x86a   :  { %6519 = vmatpush3.xpose.msk.msra.mxu0 %vm299_vm2, %v1715_v4  ;;  %v6490_v9 = vpop.f32.mrf.mxu1  ;;  %6520 = vmatprep.mubr.msk.f32.mxu0 %vm7019_vm1, %v7018_v13 }
 0x86b   :  { %6523 = vmatprep.subr.mxu0 %v7018_v13 }
 0x86c   :  { %v1632_v11 = vpop.f32.mrf.mxu1 }
 0x86d   :  { %6516 = vmatmul.mubr.msk.f32.vlgmr.msra.gmra.mxu1 %vm299_vm2, %v1632_v11  ;;  %6521 = vmatmul.mubr.msk.f32.vlgmr.msra.gmra.mxu0 %vm299_vm2, %v1713_v10 }
 0x86e   :  { %v6506_v12 = vpop.f32.mrf.mxu1  ;;  %6525 = vmatprep.mubr.msk.f32.mxu0 %vm7019_vm1, %v7018_v13  ;;  %6530 = vmatprep.mubr.msk.f32.mxu1 %vm7019_vm1, %v7018_v13 }
 0x929   :  { %v1558_v14 = vpop.f32.mrf.mxu0 }
 0x92a   :  { %v1562_v18 = vadd.f32 %v1558_v14, %v1413_v5 }
 0x92b   :  { %v6501_v15 = vpop.f32.mrf.mxu0 }
 0x92d   :  { %v1705_v20 = vpop.f32.mrf.mxu1  ;;  %v1786_v23 = vpop.f32.mrf.mxu0 }
 0x92e   :  { %v1709_v26 = vadd.f32 %v1705_v20, %v1562_v18  ;;  %v1790_v27 = vsel %vm299_vm2, %v1786_v23, -inf }
 0x92f   :  { %1791 = vmax.xlane.f32.xlu0 %v1790_v27  ;;  %v6517_v28 = vpop.f32.mrf.mxu1  ;;  %v6522_v29 = vpop.f32.mrf.mxu0 }
 0x930   :  { %v1710_v30 = vadd.f32 %v7358_v16, %v1709_v26 }
 0x932   :  { %1711 = vst.msk [vmem:[#allocation2 + $0x2] sm:$0x3] %vm1030_vm3, %v1710_v30 }
 0x945   :  { %170 = vperm.xlu0 %6946, %v156_v31  }
 0x949   :  { %2392 = vrot.lane.b32.xlu0 %v7156_v21, %s7026_s24 }
 0x9b8   :  { %v1792_v32 = vpop.xlane.xlu0 %1791 }
 0x9b9   :  { %v1793_v33 = vsub.f32 %v1786_v23, %v1792_v32 }
 0x9bb   :  { %v1794_v34 = vmul.f32 1.442695, %v1793_v33 }
 0x9bd   :  { %6955 = vpow2.f32 %v1794_v34 }
 0x9c0   :  { %v171_v43 = vpop.permute.xlu0 %170 }
 0x9c1   :  { %v7481_v51 = vadd.f32 %v7167_v25, %v171_v43 }
 0x9c3   :  { %v1877_v53 = vrot.slane %v7481_v51, 2  ;;  %v2096_v3 = vrot.slane %v7481_v51, 4  ;;  %v2243_v4 = vrot.slane %v7481_v51, 6 }
 0x9c4   :  { %v2393_v14 = vpop.permute.xlu0 %2392 }
 0x9ca   :  { %v6956_v35 = vpop.eup %6955 }
 0x9cb   :  { %v1796_v40 = vsel %vm299_vm2, %v6956_v35, 0.0 }
 0x9cc   :  { %1797 = vadd.xlane.f32.xlu1 %v1796_v40 }
 0x9dd   :  { %2394 = vrot.lane.b32.xlu1 %v7150_v19, %s7027_s25 }
 0xa55   :  { %v1798_v41 = vpop.xlane.xlu1 %1797 }
 0xa56   :  { %6957 = vrcp.f32 %v1798_v41 }
 0xa59   :  { %v2395_v11 = vpop.permute.xlu1 %2394 }
 0xa63   :  { %v6958_v22 = vpop.eup %6957 }
 0xa64   :  { %v1800_v21 = vmul.f32 %v6958_v22, %v6956_v35  ;;  %v157_v22 = vld [vmem:[%s8184_s4 + $0x18] sm:$0xff] }
 0xa66   :  { %6524 = vmatpush3.xpose.msk.msra.mxu0 %vm299_vm2, %v1800_v21  ;;  %6529 = vmatpush3.xpose.msk.msra.mxu1 %vm299_vm2, %v1800_v21 }
 0xa67   :  { %6533 = vmatprep.subr.mxu0 %v7018_v13  ;;  %6544 = vmatprep.subr.mxu1 %v7018_v13 }
 0xa69   :  { %6526 = vmatmul.mubr.msk.f32.vlgmr.msra.gmra.mxu0 %vm299_vm2, %v7481_v51  ;;  %6531 = vmatmul.mubr.msk.f32.vlgmr.msra.gmra.mxu1 %vm299_vm2, %v1877_v53 }
 0xa6a   :  { %6534 = vmatpush3.xpose.msk.msra.mxu0 %vm299_vm2, %v7224_v46  ;;  %6545 = vmatpush3.xpose.msk.msra.mxu1 %vm299_vm2, %v7181_v36 }
 0xa6b   :  { %6535 = vmatprep.subr.mxu0 %v7018_v13  ;;  %6546 = vmatprep.subr.mxu1 %v7018_v13 }
 0xa6c   :  { %6541 = vmatprep.mubr.msk.f32.mxu0 %vm7019_vm1, %v7018_v13  ;;  %6552 = vmatprep.mubr.msk.f32.mxu1 %vm7019_vm1, %v7018_v13 }
 0xa6e   :  { %6536 = vmatpush3.xpose.msk.msra.mxu0 %vm299_vm2, %v7237_v47  ;;  %6547 = vmatpush3.xpose.msk.msra.mxu1 %vm299_vm2, %v7189_v37 }
 0xa6f   :  { %6537 = vmatprep.subr.mxu0 %v7018_v13  ;;  %6548 = vmatprep.subr.mxu1 %v7018_v13 }
 0xa72   :  { %6538 = vmatpush3.xpose.msk.msra.mxu0 %vm299_vm2, %v7245_v48  ;;  %6549 = vmatpush3.xpose.msk.msra.mxu1 %vm299_vm2, %v7197_v38 }
 0xa73   :  { %6539 = vmatprep.subr.mxu0 %v7018_v13  ;;  %6550 = vmatprep.subr.mxu1 %v7018_v13 }
 0xa76   :  { %6540 = vmatpush3.xpose.msk.msra.mxu0 %vm299_vm2, %v7253_v49  ;;  %6551 = vmatpush3.xpose.msk.msra.mxu1 %vm299_vm2, %v7205_v39 }
 0xa77   :  { %6555 = vmatprep.subr.mxu0 %v7018_v13  ;;  %6560 = vmatprep.subr.mxu1 %v7018_v13 }
 0xb29   :  { %v1873_v19 = vpop.f32.mrf.mxu0  ;;  %v1946_v25 = vpop.f32.mrf.mxu1 }
 0xb2a   :  { %6542 = vmatmul.mubr.msk.f32.vlgmr.msra.gmra.mxu0 %vm299_vm2, %v1946_v25  ;;  %6553 = vmatmul.mubr.msk.f32.vlgmr.msra.gmra.mxu1 %vm299_vm2, %v1873_v19 }
 0xb2b   :  { %6556 = vmatpush3.xpose.msk.msra.mxu0 %vm299_vm2, %v1800_v21  ;;  %v6527_v55 = vpop.f32.mrf.mxu0  ;;  %v6532_v2 = vpop.f32.mrf.mxu1  ;;  %6557 = vmatprep.mubr.msk.f32.mxu0 %vm7019_vm1, %v7018_v13 }
 0xb2c   :  { %6571 = vmatprep.subr.mxu0 %v7018_v13  ;;  %6561 = vmatpush3.xpose.msk.msra.mxu1 %vm299_vm2, %v7283_v57 }
 0xb2d   :  { %6562 = vmatprep.subr.mxu1 %v7018_v13  ;;  %6568 = vmatprep.mubr.msk.f32.mxu1 %vm7019_vm1, %v7018_v13 }
 0xb2e   :  { %6558 = vmatmul.mubr.msk.f32.vlgmr.msra.gmra.mxu0 %vm299_vm2, %v2096_v3 }
 0xb2f   :  { %6572 = vmatpush3.xpose.msk.msra.mxu0 %vm299_vm2, %v1800_v21  ;;  %6573 = vmatprep.mubr.msk.f32.mxu0 %vm7019_vm1, %v7018_v13 }
 0xb30   :  { %6563 = vmatpush3.xpose.msk.msra.mxu1 %vm299_vm2, %v7306_v59  ;;  %6576 = vmatprep.subr.mxu0 %v7018_v13 }
 0xb31   :  { %6564 = vmatprep.subr.mxu1 %v7018_v13 }
 0xb32   :  { %6574 = vmatmul.mubr.msk.f32.vlgmr.msra.gmra.mxu0 %vm299_vm2, %v2243_v4 }
 0xb33   :  { %6577 = vmatpush3.xpose.msk.msra.mxu0 %vm299_vm2, %v7267_v54  ;;  %6584 = vmatprep.mubr.msk.f32.mxu0 %vm7019_vm1, %v7018_v13 }
 0xb34   :  { %6565 = vmatpush3.xpose.msk.msra.mxu1 %vm299_vm2, %v7323_v61  ;;  %6578 = vmatprep.subr.mxu0 %v7018_v13 }
 0xb35   :  { %6566 = vmatprep.subr.mxu1 %v7018_v13 }
 0xb37   :  { %6579 = vmatpush3.xpose.msk.msra.mxu0 %vm299_vm2, %v7289_v58 }
 0xb38   :  { %6567 = vmatpush3.xpose.msk.msra.mxu1 %vm299_vm2, %v7339_v63  ;;  %6580 = vmatprep.subr.mxu0 %v7018_v13 }
 0xb39   :  { %6587 = vmatprep.subr.mxu1 %v7018_v13 }
 0xb3b   :  { %6581 = vmatpush3.xpose.msk.msra.mxu0 %vm299_vm2, %v7312_v60 }
 0xb3c   :  { %6582 = vmatprep.subr.mxu0 %v7018_v13 }
 0xb3f   :  { %6583 = vmatpush3.xpose.msk.msra.mxu0 %vm299_vm2, %v7330_v62 }
 0xb40   :  { %6597 = vmatprep.subr.mxu0 %v7018_v13 }
 0xbea   :  { %v2019_v5 = vpop.f32.mrf.mxu0  ;;  %v2092_v6 = vpop.f32.mrf.mxu1 }
 0xbeb   :  { %v2093_v7 = vadd.f32 %v2092_v6, %v2019_v5 }
 0xbec   :  { %v6543_v8 = vpop.f32.mrf.mxu0  ;;  %v6554_v9 = vpop.f32.mrf.mxu1 }
 0xbee   :  { %v2165_v10 = vpop.f32.mrf.mxu0 }
 0xbef   :  { %6569 = vmatmul.mubr.msk.f32.vlgmr.msra.gmra.mxu1 %vm299_vm2, %v2165_v10 }
 0xbf0   :  { %6588 = vmatpush3.xpose.msk.msra.mxu1 %vm299_vm2, %v2395_v11  ;;  %v6559_v12 = vpop.f32.mrf.mxu0  ;;  %6589 = vmatprep.mubr.msk.f32.mxu1 %vm7019_vm1, %v7018_v13 }
 0xbf1   :  { %6592 = vmatprep.subr.mxu1 %v7018_v13 }
 0xbf2   :  { %v2312_v15 = vpop.f32.mrf.mxu0 }
 0xbf3   :  { %6585 = vmatmul.mubr.msk.f32.vlgmr.msra.gmra.mxu0 %vm299_vm2, %v2312_v15  ;;  %6590 = vmatmul.mubr.msk.f32.vlgmr.msra.gmra.mxu1 %vm299_vm2, %v2393_v14 }
 0xbf4   :  { %v6575_v18 = vpop.f32.mrf.mxu0  ;;  %6594 = vmatprep.mubr.msk.f32.mxu1 %vm7019_vm1, %v7018_v13  ;;  %6599 = vmatprep.mubr.msk.f32.mxu0 %vm7019_vm1, %v7018_v13 }
 0xcaf   :  { %v2238_v20 = vpop.f32.mrf.mxu1 }
 0xcb0   :  { %v2242_v26 = vadd.f32 %v2238_v20, %v2093_v7 }
 0xcb1   :  { %v6570_v23 = vpop.f32.mrf.mxu1 }
 0xcb3   :  { %v2385_v27 = vpop.f32.mrf.mxu0  ;;  %v2466_v28 = vpop.f32.mrf.mxu1 }
 0xcb4   :  { %v2389_v29 = vadd.f32 %v2385_v27, %v2242_v26  ;;  %v2470_v30 = vsel %vm299_vm2, %v2466_v28, -inf  ;;  %v7679_v27 = vmul.f32 0.35355338, %v7148_v17 }
 0xcb5   :  { %v6586_v31 = vpop.f32.mrf.mxu0  ;;  %2471 = vmax.xlane.f32.xlu1 %v2470_v30  ;;  %v6591_v32 = vpop.f32.mrf.mxu1 }
 0xcb6   :  { %v2390_v33 = vadd.f32 %v7358_v16, %v2389_v29 }
 0xcb8   :  { %2391 = vst.msk [vmem:[#allocation2 + $0x4] sm:$0x3] %vm1030_vm3, %v2390_v33 }
 0xcc6   :  { %3074 = vrot.lane.b32.xlu1 %v7148_v17, %s7020_s3 }
 0xd3e   :  { %v2472_v34 = vpop.xlane.xlu1 %2471 }
 0xd3f   :  { %v2473_v35 = vsub.f32 %v2466_v28, %v2472_v34 }
 0xd41   :  { %v2474_v40 = vmul.f32 1.442695, %v2473_v35 }
 0xd42   :  { %v3075_v23 = vpop.permute.xlu1 %3074 }
 0xd43   :  { %6959 = vpow2.f32 %v2474_v40 }
 0xd50   :  { %v6960_v41 = vpop.eup %6959 }
 0xd51   :  { %v2476_v43 = vsel %vm299_vm2, %v6960_v41, 0.0 }
 0xd52   :  { %2477 = vadd.xlane.f32.xlu0 %v2476_v43 }
 0xd68   :  { %175 = vperm.xlu0 %6946, %v157_v22  }
 0xddb   :  { %v2478_v21 = vpop.xlane.xlu0 %2477 }
 0xddc   :  { %6961 = vrcp.f32 %v2478_v21 }
 0xde3   :  { %v176_v19 = vpop.permute.xlu0 %175 }
 0xde4   :  { %v7588_v55 = vadd.f32 %v7165_v24, %v176_v19 }
 0xde6   :  { %v2557_v5 = vrot.slane %v7588_v55, 2  ;;  %v2776_v9 = vrot.slane %v7588_v55, 4  ;;  %v2923_v10 = vrot.slane %v7588_v55, 6 }
 0xde9   :  { %v6962_v25 = vpop.eup %6961 }
 0xdea   :  { %v2480_v2 = vmul.f32 %v6962_v25, %v6960_v41 }
 0xdec   :  { %6593 = vmatpush3.xpose.msk.msra.mxu1 %vm299_vm2, %v2480_v2  ;;  %6598 = vmatpush3.xpose.msk.msra.mxu0 %vm299_vm2, %v2480_v2 }
 0xded   :  { %6602 = vmatprep.subr.mxu1 %v7018_v13  ;;  %6613 = vmatprep.subr.mxu0 %v7018_v13 }
 0xdef   :  { %6595 = vmatmul.mubr.msk.f32.vlgmr.msra.gmra.mxu1 %vm299_vm2, %v7588_v55  ;;  %6600 = vmatmul.mubr.msk.f32.vlgmr.msra.gmra.mxu0 %vm299_vm2, %v2557_v5 }
 0xdf0   :  { %6603 = vmatpush3.xpose.msk.msra.mxu1 %vm299_vm2, %v7224_v46  ;;  %6614 = vmatpush3.xpose.msk.msra.mxu0 %vm299_vm2, %v7181_v36 }
 0xdf1   :  { %6604 = vmatprep.subr.mxu1 %v7018_v13  ;;  %6615 = vmatprep.subr.mxu0 %v7018_v13 }
 0xdf2   :  { %6610 = vmatprep.mubr.msk.f32.mxu1 %vm7019_vm1, %v7018_v13  ;;  %6621 = vmatprep.mubr.msk.f32.mxu0 %vm7019_vm1, %v7018_v13 }
 0xdf4   :  { %6605 = vmatpush3.xpose.msk.msra.mxu1 %vm299_vm2, %v7237_v47  ;;  %6616 = vmatpush3.xpose.msk.msra.mxu0 %vm299_vm2, %v7189_v37 }
 0xdf5   :  { %6606 = vmatprep.subr.mxu1 %v7018_v13  ;;  %6617 = vmatprep.subr.mxu0 %v7018_v13 }
 0xdf8   :  { %6607 = vmatpush3.xpose.msk.msra.mxu1 %vm299_vm2, %v7245_v48  ;;  %6618 = vmatpush3.xpose.msk.msra.mxu0 %vm299_vm2, %v7197_v38 }
 0xdf9   :  { %6608 = vmatprep.subr.mxu1 %v7018_v13  ;;  %6619 = vmatprep.subr.mxu0 %v7018_v13 }
 0xdfc   :  { %6609 = vmatpush3.xpose.msk.msra.mxu1 %vm299_vm2, %v7253_v49  ;;  %6620 = vmatpush3.xpose.msk.msra.mxu0 %vm299_vm2, %v7205_v39 }
 0xdfd   :  { %6624 = vmatprep.subr.mxu1 %v7018_v13  ;;  %6629 = vmatprep.subr.mxu0 %v7018_v13 }
 0xeaf   :  { %v2553_v24 = vpop.f32.mrf.mxu1  ;;  %v2626_v6 = vpop.f32.mrf.mxu0 }
 0xeb0   :  { %6611 = vmatmul.mubr.msk.f32.vlgmr.msra.gmra.mxu1 %vm299_vm2, %v2626_v6  ;;  %6622 = vmatmul.mubr.msk.f32.vlgmr.msra.gmra.mxu0 %vm299_vm2, %v2553_v24 }
 0xeb1   :  { %6625 = vmatpush3.xpose.msk.msra.mxu1 %vm299_vm2, %v2480_v2  ;;  %v6596_v7 = vpop.f32.mrf.mxu1  ;;  %v6601_v8 = vpop.f32.mrf.mxu0  ;;  %6626 = vmatprep.mubr.msk.f32.mxu1 %vm7019_vm1, %v7018_v13 }
 0xeb2   :  { %6640 = vmatprep.subr.mxu1 %v7018_v13  ;;  %6630 = vmatpush3.xpose.msk.msra.mxu0 %vm299_vm2, %v7283_v57 }
 0xeb3   :  { %6631 = vmatprep.subr.mxu0 %v7018_v13  ;;  %6637 = vmatprep.mubr.msk.f32.mxu0 %vm7019_vm1, %v7018_v13 }
 0xeb4   :  { %6627 = vmatmul.mubr.msk.f32.vlgmr.msra.gmra.mxu1 %vm299_vm2, %v2776_v9 }
 0xeb5   :  { %6641 = vmatpush3.xpose.msk.msra.mxu1 %vm299_vm2, %v2480_v2  ;;  %6642 = vmatprep.mubr.msk.f32.mxu1 %vm7019_vm1, %v7018_v13 }
 0xeb6   :  { %6632 = vmatpush3.xpose.msk.msra.mxu0 %vm299_vm2, %v7306_v59  ;;  %6645 = vmatprep.subr.mxu1 %v7018_v13 }
 0xeb7   :  { %6633 = vmatprep.subr.mxu0 %v7018_v13 }
 0xeb8   :  { %6643 = vmatmul.mubr.msk.f32.vlgmr.msra.gmra.mxu1 %vm299_vm2, %v2923_v10 }
 0xeb9   :  { %6646 = vmatpush3.xpose.msk.msra.mxu1 %vm299_vm2, %v7267_v54  ;;  %6653 = vmatprep.mubr.msk.f32.mxu1 %vm7019_vm1, %v7018_v13 }
 0xeba   :  { %6634 = vmatpush3.xpose.msk.msra.mxu0 %vm299_vm2, %v7323_v61  ;;  %6647 = vmatprep.subr.mxu1 %v7018_v13 }
 0xebb   :  { %6635 = vmatprep.subr.mxu0 %v7018_v13 }
 0xebd   :  { %6648 = vmatpush3.xpose.msk.msra.mxu1 %vm299_vm2, %v7289_v58 }
 0xebe   :  { %6636 = vmatpush3.xpose.msk.msra.mxu0 %vm299_vm2, %v7339_v63  ;;  %6649 = vmatprep.subr.mxu1 %v7018_v13 }
 0xebf   :  { %6656 = vmatprep.subr.mxu0 %v7018_v13 }
 0xec1   :  { %6650 = vmatpush3.xpose.msk.msra.mxu1 %vm299_vm2, %v7312_v60 }
 0xec2   :  { %6651 = vmatprep.subr.mxu1 %v7018_v13 }
 0xec5   :  { %6652 = vmatpush3.xpose.msk.msra.mxu1 %vm299_vm2, %v7330_v62 }
 0xec6   :  { %6666 = vmatprep.subr.mxu1 %v7018_v13 }
 0xf70   :  { %v2699_v11 = vpop.f32.mrf.mxu1  ;;  %v2772_v12 = vpop.f32.mrf.mxu0 }
 0xf71   :  { %v2773_v14 = vadd.f32 %v2772_v12, %v2699_v11 }
 0xf72   :  { %v6612_v15 = vpop.f32.mrf.mxu1  ;;  %v6623_v18 = vpop.f32.mrf.mxu0 }
 0xf74   :  { %v2845_v20 = vpop.f32.mrf.mxu1 }
 0xf75   :  { %6638 = vmatmul.mubr.msk.f32.vlgmr.msra.gmra.mxu0 %vm299_vm2, %v2845_v20 }
 0xf76   :  { %6657 = vmatpush3.xpose.msk.msra.mxu0 %vm299_vm2, %v3075_v23  ;;  %v6628_v26 = vpop.f32.mrf.mxu1  ;;  %6658 = vmatprep.mubr.msk.f32.mxu0 %vm7019_vm1, %v7018_v13 }
 0xf77   :  { %6661 = vmatprep.subr.mxu0 %v7018_v13 }
 0xf78   :  { %v2992_v28 = vpop.f32.mrf.mxu1 }
 0xf79   :  { %6654 = vmatmul.mubr.msk.f32.vlgmr.msra.gmra.mxu1 %vm299_vm2, %v2992_v28  ;;  %6659 = vmatmul.mubr.msk.f32.vlgmr.msra.gmra.mxu0 %vm299_vm2, %v7679_v27 }
 0xf7a   :  { %v6644_v29 = vpop.f32.mrf.mxu1  ;;  %6663 = vmatprep.mubr.msk.f32.mxu0 %vm7019_vm1, %v7018_v13  ;;  %6668 = vmatprep.mubr.msk.f32.mxu1 %vm7019_vm1, %v7018_v13 }
0x1035   :  { %v2918_v30 = vpop.f32.mrf.mxu0 }
0x1036   :  { %v2922_v32 = vadd.f32 %v2918_v30, %v2773_v14 }
0x1037   :  { %v6639_v31 = vpop.f32.mrf.mxu0 }
0x1039   :  { %v3065_v33 = vpop.f32.mrf.mxu1  ;;  %v3147_v34 = vpop.f32.mrf.mxu0 }
0x103a   :  { %v3069_v35 = vadd.f32 %v3065_v33, %v2922_v32  ;;  %v3151_v40 = vsel %vm299_vm2, %v3147_v34, -inf }
0x103b   :  { %3152 = vmax.xlane.f32.xlu1 %v3151_v40  ;;  %v6655_v41 = vpop.f32.mrf.mxu1  ;;  %v6660_v43 = vpop.f32.mrf.mxu0  ;;  %v7841_v40 = vld [vmem:[%s8185_s5 + $0x30] sm:$0xff] }
0x103c   :  { %v3070_v22 = vadd.f32 %v7358_v16, %v3069_v35  ;;  %v7848_v41 = vld [vmem:[%s8185_s5 + $0x10] sm:$0xff]  ;;  %v7857_v43 = vld [vmem:[%s8185_s5 + $0x28] sm:$0xff] }
0x103e   :  { %3071 = vst.msk [vmem:[#allocation2 + $0x6] sm:$0x3] %vm1030_vm3, %v3070_v22  ;;  %v7864_v22 = vld [vmem:[%s8185_s5 + $0x8] sm:$0xff] }
0x104c   :  { %3162 = vrot.lane.b32.xlu1 %v7211_v44, %s7023_s8 }
0x1050   :  { %3459 = vrot.lane.b32.xlu1 %v705_v56, %s7023_s8 }
0x1054   :  { %3757 = vrot.lane.b32.xlu1 %v7679_v27, %s7023_s8 }
0x10c4   :  { %v3153_v21 = vpop.xlane.xlu1 %3152 }
0x10c5   :  { %v3154_v19 = vsub.f32 %v3147_v34, %v3153_v21  ;;  %v7873_v21 = vld [vmem:[%s8185_s5 + $0x20] sm:$0xff] }
0x10c7   :  { %v3155_v25 = vmul.f32 1.442695, %v3154_v19  ;;  %v7880_v19 = vld [vmem:[%s8185_s5] sm:$0xff] }
0x10c9   :  { %6963 = vpow2.f32 %v3155_v25 }
0x10d6   :  { %v6964_v2 = vpop.eup %6963 }
0x10d7   :  { %v3157_v24 = vsel %vm299_vm2, %v6964_v2, 0.0 }
0x10d8   :  { %3158 = vadd.xlane.f32.xlu0 %v3157_v24 }
0x10ee   :  { %3239 = vrot.lane.b32.xlu0 %v462_v45, %s7023_s8  ;;  %v3163_v45 = vpop.permute.xlu1 %3162 }
0x10f2   :  { %3759 = vrot.lane.b32.xlu0 %v7148_v17, %s7022_s30 }
0x10f6   :  { %3607 = vrot.lane.b32.xlu0 %v864_v52, %s7023_s8 }
0x1161   :  { %v3159_v56 = vpop.xlane.xlu0 %3158 }
0x1162   :  { %6965 = vrcp.f32 %v3159_v56 }
0x1165   :  { %v3240_v8 = vpop.permute.xlu0 %3239 }
0x1169   :  { %v3760_v44 = vpop.permute.xlu0 %3759 }
0x116f   :  { %v6966_v6 = vpop.eup %6965 }
0x1170   :  { %v3161_v7 = vmul.f32 %v6966_v6, %v6964_v2 }
0x1172   :  { %6662 = vmatpush3.xpose.msk.msra.mxu0 %vm299_vm2, %v3161_v7  ;;  %6667 = vmatpush3.xpose.msk.msra.mxu1 %vm299_vm2, %v3161_v7 }
0x1173   :  { %6671 = vmatprep.subr.mxu0 %v7018_v13  ;;  %6682 = vmatprep.subr.mxu1 %v7018_v13 }
0x1175   :  { %6664 = vmatmul.mubr.msk.f32.vlgmr.msra.gmra.mxu0 %vm299_vm2, %v3163_v45  ;;  %6669 = vmatmul.mubr.msk.f32.vlgmr.msra.gmra.mxu1 %vm299_vm2, %v3240_v8  ;;  %v7909_v8 = vld [vmem:[%s8185_s5 + $0x50] sm:$0xff] }
0x1176   :  { %6672 = vmatpush3.xpose.msk.msra.mxu0 %vm299_vm2, %v7224_v46  ;;  %6683 = vmatpush3.xpose.msk.msra.mxu1 %vm299_vm2, %v7181_v36 }
0x1177   :  { %6673 = vmatprep.subr.mxu0 %v7018_v13  ;;  %6684 = vmatprep.subr.mxu1 %v7018_v13 }
0x1178   :  { %6679 = vmatprep.mubr.msk.f32.mxu0 %vm7019_vm1, %v7018_v13  ;;  %6690 = vmatprep.mubr.msk.f32.mxu1 %vm7019_vm1, %v7018_v13 }
0x117a   :  { %6674 = vmatpush3.xpose.msk.msra.mxu0 %vm299_vm2, %v7237_v47  ;;  %6685 = vmatpush3.xpose.msk.msra.mxu1 %vm299_vm2, %v7189_v37  ;;  %v3608_v47 = vpop.permute.xlu0 %3607 }
0x117b   :  { %6675 = vmatprep.subr.mxu0 %v7018_v13  ;;  %6686 = vmatprep.subr.mxu1 %v7018_v13 }
0x117e   :  { %6676 = vmatpush3.xpose.msk.msra.mxu0 %vm299_vm2, %v7245_v48  ;;  %6687 = vmatpush3.xpose.msk.msra.mxu1 %vm299_vm2, %v7197_v38 }
0x117f   :  { %6677 = vmatprep.subr.mxu0 %v7018_v13  ;;  %6688 = vmatprep.subr.mxu1 %v7018_v13 }
0x1182   :  { %6678 = vmatpush3.xpose.msk.msra.mxu0 %vm299_vm2, %v7253_v49  ;;  %6689 = vmatpush3.xpose.msk.msra.mxu1 %vm299_vm2, %v7205_v39  ;;  %v3460_v39 = vpop.permute.xlu1 %3459 }
0x1183   :  { %6693 = vmatprep.subr.mxu0 %v7018_v13  ;;  %6698 = vmatprep.subr.mxu1 %v7018_v13 }
0x1235   :  { %v3235_v36 = vpop.f32.mrf.mxu0  ;;  %v3309_v37 = vpop.f32.mrf.mxu1 }
0x1236   :  { %6680 = vmatmul.mubr.msk.f32.vlgmr.msra.gmra.mxu0 %vm299_vm2, %v3309_v37  ;;  %6691 = vmatmul.mubr.msk.f32.vlgmr.msra.gmra.mxu1 %vm299_vm2, %v3235_v36  ;;  %v7919_v37 = vld [vmem:[%s8185_s5 + $0x78] sm:$0xff] }
0x1237   :  { %6694 = vmatpush3.xpose.msk.msra.mxu0 %vm299_vm2, %v3161_v7  ;;  %v6665_v38 = vpop.f32.mrf.mxu0  ;;  %v6670_v46 = vpop.f32.mrf.mxu1  ;;  %6695 = vmatprep.mubr.msk.f32.mxu0 %vm7019_vm1, %v7018_v13 }
0x1238   :  { %6709 = vmatprep.subr.mxu0 %v7018_v13  ;;  %6699 = vmatpush3.xpose.msk.msra.mxu1 %vm299_vm2, %v7283_v57  ;;  %v7937_v38 = vld [vmem:[%s8185_s5 + $0x70] sm:$0xff]  ;;  %v7944_v46 = vld [vmem:[%s8185_s5 + $0x40] sm:$0xff] }
0x1239   :  { %6700 = vmatprep.subr.mxu1 %v7018_v13  ;;  %6706 = vmatprep.mubr.msk.f32.mxu1 %vm7019_vm1, %v7018_v13 }
0x123a   :  { %6696 = vmatmul.mubr.msk.f32.vlgmr.msra.gmra.mxu0 %vm299_vm2, %v3460_v39  ;;  %v7953_v39 = vld [vmem:[%s8185_s5 + $0x68] sm:$0xff] }
0x123b   :  { %6710 = vmatpush3.xpose.msk.msra.mxu0 %vm299_vm2, %v3161_v7  ;;  %6711 = vmatprep.mubr.msk.f32.mxu0 %vm7019_vm1, %v7018_v13  ;;  %v7895_v7 = vld [vmem:[%s8185_s5 + $0x58] sm:$0xff] }
0x123c   :  { %6701 = vmatpush3.xpose.msk.msra.mxu1 %vm299_vm2, %v7306_v59  ;;  %6714 = vmatprep.subr.mxu0 %v7018_v13 }
0x123d   :  { %6702 = vmatprep.subr.mxu1 %v7018_v13 }
0x123e   :  { %6712 = vmatmul.mubr.msk.f32.vlgmr.msra.gmra.mxu0 %vm299_vm2, %v3608_v47  ;;  %v7961_v47 = vld [vmem:[%s8185_s5 + $0x60] sm:$0xff] }
0x123f   :  { %6715 = vmatpush3.xpose.msk.msra.mxu0 %vm299_vm2, %v7267_v54  ;;  %6722 = vmatprep.mubr.msk.f32.mxu0 %vm7019_vm1, %v7018_v13 }
0x1240   :  { %6703 = vmatpush3.xpose.msk.msra.mxu1 %vm299_vm2, %v7323_v61  ;;  %6716 = vmatprep.subr.mxu0 %v7018_v13 }
0x1241   :  { %6704 = vmatprep.subr.mxu1 %v7018_v13 }
0x1243   :  { %6717 = vmatpush3.xpose.msk.msra.mxu0 %vm299_vm2, %v7289_v58 }
0x1244   :  { %6705 = vmatpush3.xpose.msk.msra.mxu1 %vm299_vm2, %v7339_v63  ;;  %6718 = vmatprep.subr.mxu0 %v7018_v13 }
0x1245   :  { %6725 = vmatprep.subr.mxu1 %v7018_v13 }
0x1247   :  { %6719 = vmatpush3.xpose.msk.msra.mxu0 %vm299_vm2, %v7312_v60  ;;  %v3758_v60 = vpop.permute.xlu1 %3757 }
0x1248   :  { %6720 = vmatprep.subr.mxu0 %v7018_v13 }
0x124b   :  { %6721 = vmatpush3.xpose.msk.msra.mxu0 %vm299_vm2, %v7330_v62 }
0x124c   :  { %6735 = vmatprep.subr.mxu0 %v7018_v13 }
0x12f6   :  { %v3382_v48 = vpop.f32.mrf.mxu0  ;;  %v3455_v49 = vpop.f32.mrf.mxu1 }
0x12f7   :  { %v3456_v52 = vadd.f32 %v3455_v49, %v3382_v48 }
0x12f8   :  { %v6681_v54 = vpop.f32.mrf.mxu0  ;;  %v6692_v57 = vpop.f32.mrf.mxu1 }
0x12fa   :  { %v3529_v58 = vpop.f32.mrf.mxu0 }
0x12fb   :  { %6707 = vmatmul.mubr.msk.f32.vlgmr.msra.gmra.mxu1 %vm299_vm2, %v3529_v58 }
0x12fc   :  { %6726 = vmatpush3.xpose.msk.msra.mxu1 %vm299_vm2, %v3760_v44  ;;  %v6697_v59 = vpop.f32.mrf.mxu0  ;;  %6727 = vmatprep.mubr.msk.f32.mxu1 %vm7019_vm1, %v7018_v13  ;;  %v7928_v44 = vld [vmem:[%s8185_s5 + $0x48] sm:$0xff] }
0x12fd   :  { %6730 = vmatprep.subr.mxu1 %v7018_v13 }
0x12fe   :  { %v3677_v61 = vpop.f32.mrf.mxu0 }
0x12ff   :  { %6723 = vmatmul.mubr.msk.f32.vlgmr.msra.gmra.mxu0 %vm299_vm2, %v3677_v61  ;;  %6728 = vmatmul.mubr.msk.f32.vlgmr.msra.gmra.mxu1 %vm299_vm2, %v3758_v60 }
0x1300   :  { %v6713_v62 = vpop.f32.mrf.mxu0  ;;  %6732 = vmatprep.mubr.msk.f32.mxu1 %vm7019_vm1, %v7018_v13  ;;  %6737 = vmatprep.mubr.msk.f32.mxu0 %vm7019_vm1, %v7018_v13 }
0x13bb   :  { %v3602_v63 = vpop.f32.mrf.mxu1 }
0x13bc   :  { %v3606_v12 = vadd.f32 %v3602_v63, %v3456_v52 }
0x13bd   :  { %v6708_v11 = vpop.f32.mrf.mxu1 }
0x13bf   :  { %v3750_v14 = vpop.f32.mrf.mxu0  ;;  %v3831_v15 = vpop.f32.mrf.mxu1 }
0x13c0   :  { %v3754_v18 = vadd.f32 %v3750_v14, %v3606_v12  ;;  %v3835_v20 = vsel %vm299_vm2, %v3831_v15, -inf }
0x13c1   :  { %v6724_v23 = vpop.f32.mrf.mxu0  ;;  %3836 = vmax.xlane.f32.xlu1 %v3835_v20  ;;  %v6729_v26 = vpop.f32.mrf.mxu1 }
0x13c2   :  { %v3755_v28 = vadd.f32 %v7358_v16, %v3754_v18 }
0x13c4   :  { %3756 = vst.msk [vmem:[#allocation2 + $0x8] sm:$0x3] %vm1030_vm3, %v3755_v28  ;;  %v7981_v28 = vld [vmem:[%s8186_s6] ss:$0 sm:$0xff]  ;;  %s7028_s6 = smov [#allocation2]  }
0x13d2   :  { %3846 = vrot.lane.b32.xlu1 %v7372_v42, %s7023_s8  ;;  %v7821_v42 = vld [vmem:[%s8185_s5 + $0x38] sm:$0xff] }
0x13d6   :  { %4143 = vrot.lane.b32.xlu1 %v1416_v0, %s7023_s8 }
0x13da   :  { %4441 = vrot.lane.b32.xlu1 %v7679_v27, %s7025_s19 }
0x144a   :  { %v3837_v29 = vpop.xlane.xlu1 %3836 }
0x144b   :  { %v3838_v30 = vsub.f32 %v3831_v15, %v3837_v29 }
0x144d   :  { %v3839_v31 = vmul.f32 1.442695, %v3838_v30 }
0x144f   :  { %6967 = vpow2.f32 %v3839_v31 }
0x145c   :  { %v6968_v32 = vpop.eup %6967 }
0x145d   :  { %v3841_v33 = vsel %vm299_vm2, %v6968_v32, 0.0 }
0x145e   :  { %3842 = vadd.xlane.f32.xlu0 %v3841_v33 }
0x1474   :  { %3923 = vrot.lane.b32.xlu0 %v1197_v50, %s7023_s8  ;;  %v3847_v50 = vpop.permute.xlu1 %3846 }
0x1478   :  { %4443 = vrot.lane.b32.xlu0 %v7148_v17, %s7024_s18  ;;  %v4144_v45 = vpop.permute.xlu1 %4143 }
0x147c   :  { %4291 = vrot.lane.b32.xlu0 %v1563_v1, %s7023_s8  ;;  %v7828_v1 = vld [vmem:[%s8185_s5 + $0x18] sm:$0xff]  ;;  %v4442_v60 = vpop.permute.xlu1 %4441 }
0x14e7   :  { %v3843_v16 = vpop.xlane.xlu0 %3842 }
0x14e8   :  { %6969 = vrcp.f32 %v3843_v16 }
0x14eb   :  { %v3924_v35 = vpop.permute.xlu0 %3923 }
0x14ef   :  { %v4444_v24 = vpop.permute.xlu0 %4443 }
0x14f3   :  { %v4292_v36 = vpop.permute.xlu0 %4291 }
0x14f5   :  { %v6970_v0 = vpop.eup %6969 }
0x14f6   :  { %v3845_v34 = vmul.f32 %v6970_v0, %v6968_v32 }
0x14f8   :  { %6731 = vmatpush3.xpose.msk.msra.mxu1 %vm299_vm2, %v3845_v34  ;;  %6736 = vmatpush3.xpose.msk.msra.mxu0 %vm299_vm2, %v3845_v34 }
0x14f9   :  { %6740 = vmatprep.subr.mxu1 %v7018_v13  ;;  %6751 = vmatprep.subr.mxu0 %v7018_v13 }
0x14fb   :  { %6733 = vmatmul.mubr.msk.f32.vlgmr.msra.gmra.mxu1 %vm299_vm2, %v3847_v50  ;;  %6738 = vmatmul.mubr.msk.f32.vlgmr.msra.gmra.mxu0 %vm299_vm2, %v3924_v35 }
0x14fc   :  { %6741 = vmatpush3.xpose.msk.msra.mxu1 %vm299_vm2, %v7821_v42  ;;  %6752 = vmatpush3.xpose.msk.msra.mxu0 %vm299_vm2, %v7828_v1 }
0x14fd   :  { %6742 = vmatprep.subr.mxu1 %v7018_v13  ;;  %6753 = vmatprep.subr.mxu0 %v7018_v13 }
0x14fe   :  { %6748 = vmatprep.mubr.msk.f32.mxu1 %vm7019_vm1, %v7018_v13  ;;  %6759 = vmatprep.mubr.msk.f32.mxu0 %vm7019_vm1, %v7018_v13 }
0x1500   :  { %6743 = vmatpush3.xpose.msk.msra.mxu1 %vm299_vm2, %v7841_v40  ;;  %6754 = vmatpush3.xpose.msk.msra.mxu0 %vm299_vm2, %v7848_v41 }
0x1501   :  { %6744 = vmatprep.subr.mxu1 %v7018_v13  ;;  %6755 = vmatprep.subr.mxu0 %v7018_v13 }
0x1504   :  { %6745 = vmatpush3.xpose.msk.msra.mxu1 %vm299_vm2, %v7857_v43  ;;  %6756 = vmatpush3.xpose.msk.msra.mxu0 %vm299_vm2, %v7864_v22 }
0x1505   :  { %6746 = vmatprep.subr.mxu1 %v7018_v13  ;;  %6757 = vmatprep.subr.mxu0 %v7018_v13 }
0x1508   :  { %6747 = vmatpush3.xpose.msk.msra.mxu1 %vm299_vm2, %v7873_v21  ;;  %6758 = vmatpush3.xpose.msk.msra.mxu0 %vm299_vm2, %v7880_v19 }
0x1509   :  { %6762 = vmatprep.subr.mxu1 %v7018_v13  ;;  %6767 = vmatprep.subr.mxu0 %v7018_v13 }
0x15bb   :  { %v3919_v25 = vpop.f32.mrf.mxu1  ;;  %v3993_v2 = vpop.f32.mrf.mxu0 }
0x15bc   :  { %6749 = vmatmul.mubr.msk.f32.vlgmr.msra.gmra.mxu1 %vm299_vm2, %v3993_v2  ;;  %6760 = vmatmul.mubr.msk.f32.vlgmr.msra.gmra.mxu0 %vm299_vm2, %v3919_v25 }
0x15bd   :  { %6763 = vmatpush3.xpose.msk.msra.mxu1 %vm299_vm2, %v3845_v34  ;;  %v6734_v56 = vpop.f32.mrf.mxu1  ;;  %v6739_v6 = vpop.f32.mrf.mxu0  ;;  %6764 = vmatprep.mubr.msk.f32.mxu1 %vm7019_vm1, %v7018_v13 }
0x15be   :  { %6778 = vmatprep.subr.mxu1 %v7018_v13  ;;  %6768 = vmatpush3.xpose.msk.msra.mxu0 %vm299_vm2, %v7895_v7 }
0x15bf   :  { %6769 = vmatprep.subr.mxu0 %v7018_v13  ;;  %6775 = vmatprep.mubr.msk.f32.mxu0 %vm7019_vm1, %v7018_v13 }
0x15c0   :  { %6765 = vmatmul.mubr.msk.f32.vlgmr.msra.gmra.mxu1 %vm299_vm2, %v4144_v45 }
0x15c1   :  { %6779 = vmatpush3.xpose.msk.msra.mxu1 %vm299_vm2, %v3845_v34  ;;  %6780 = vmatprep.mubr.msk.f32.mxu1 %vm7019_vm1, %v7018_v13 }
0x15c2   :  { %6770 = vmatpush3.xpose.msk.msra.mxu0 %vm299_vm2, %v7909_v8  ;;  %6783 = vmatprep.subr.mxu1 %v7018_v13 }
0x15c3   :  { %6771 = vmatprep.subr.mxu0 %v7018_v13 }
0x15c4   :  { %6781 = vmatmul.mubr.msk.f32.vlgmr.msra.gmra.mxu1 %vm299_vm2, %v4292_v36 }
0x15c5   :  { %6784 = vmatpush3.xpose.msk.msra.mxu1 %vm299_vm2, %v7919_v37  ;;  %6791 = vmatprep.mubr.msk.f32.mxu1 %vm7019_vm1, %v7018_v13 }
0x15c6   :  { %6772 = vmatpush3.xpose.msk.msra.mxu0 %vm299_vm2, %v7928_v44  ;;  %6785 = vmatprep.subr.mxu1 %v7018_v13 }
0x15c7   :  { %6773 = vmatprep.subr.mxu0 %v7018_v13 }
0x15c9   :  { %6786 = vmatpush3.xpose.msk.msra.mxu1 %vm299_vm2, %v7937_v38 }
0x15ca   :  { %6774 = vmatpush3.xpose.msk.msra.mxu0 %vm299_vm2, %v7944_v46  ;;  %6787 = vmatprep.subr.mxu1 %v7018_v13 }
0x15cb   :  { %6794 = vmatprep.subr.mxu0 %v7018_v13 }
0x15cd   :  { %6788 = vmatpush3.xpose.msk.msra.mxu1 %vm299_vm2, %v7953_v39 }
0x15ce   :  { %6789 = vmatprep.subr.mxu1 %v7018_v13 }
0x15d1   :  { %6790 = vmatpush3.xpose.msk.msra.mxu1 %vm299_vm2, %v7961_v47 }
0x15d2   :  { %6804 = vmatprep.subr.mxu1 %v7018_v13 }
0x167c   :  { %v4066_v48 = vpop.f32.mrf.mxu1  ;;  %v4139_v49 = vpop.f32.mrf.mxu0 }
0x167d   :  { %v4140_v52 = vadd.f32 %v4139_v49, %v4066_v48 }
0x167e   :  { %v6750_v54 = vpop.f32.mrf.mxu1  ;;  %v6761_v57 = vpop.f32.mrf.mxu0 }
0x1680   :  { %v4213_v58 = vpop.f32.mrf.mxu1 }
0x1681   :  { %6776 = vmatmul.mubr.msk.f32.vlgmr.msra.gmra.mxu0 %vm299_vm2, %v4213_v58 }
0x1682   :  { %6795 = vmatpush3.xpose.msk.msra.mxu0 %vm299_vm2, %v4444_v24  ;;  %v6766_v59 = vpop.f32.mrf.mxu1  ;;  %6796 = vmatprep.mubr.msk.f32.mxu0 %vm7019_vm1, %v7018_v13 }
0x1683   :  { %6799 = vmatprep.subr.mxu0 %v7018_v13 }
0x1684   :  { %v4361_v61 = vpop.f32.mrf.mxu1 }
0x1685   :  { %6792 = vmatmul.mubr.msk.f32.vlgmr.msra.gmra.mxu1 %vm299_vm2, %v4361_v61  ;;  %6797 = vmatmul.mubr.msk.f32.vlgmr.msra.gmra.mxu0 %vm299_vm2, %v4442_v60 }
0x1686   :  { %v6782_v62 = vpop.f32.mrf.mxu1  ;;  %6801 = vmatprep.mubr.msk.f32.mxu0 %vm7019_vm1, %v7018_v13  ;;  %6806 = vmatprep.mubr.msk.f32.mxu1 %vm7019_vm1, %v7018_v13 }
0x1741   :  { %v4286_v63 = vpop.f32.mrf.mxu0 }
0x1742   :  { %v4290_v12 = vadd.f32 %v4286_v63, %v4140_v52 }
0x1743   :  { %v6777_v11 = vpop.f32.mrf.mxu0 }
0x1745   :  { %v4434_v14 = vpop.f32.mrf.mxu1  ;;  %v4515_v15 = vpop.f32.mrf.mxu0 }
0x1746   :  { %v4438_v18 = vadd.f32 %v4434_v14, %v4290_v12  ;;  %v4519_v20 = vsel %vm299_vm2, %v4515_v15, -inf }
0x1747   :  { %4520 = vmax.xlane.f32.xlu1 %v4519_v20  ;;  %v6793_v23 = vpop.f32.mrf.mxu1  ;;  %v6798_v26 = vpop.f32.mrf.mxu0 }
0x1748   :  { %v4439_v29 = vadd.f32 %v7981_v28, %v4438_v18 }
0x174a   :  { %4440 = vst.msk [vmem:[#allocation2 + $0xa] sm:$0x3] %vm1030_vm3, %v4439_v29 }
0x1758   :  { %4530 = vrot.lane.b32.xlu1 %v7481_v51, %s7023_s8 }
0x175c   :  { %4827 = vrot.lane.b32.xlu1 %v2096_v3, %s7023_s8 }
0x1760   :  { %5125 = vrot.lane.b32.xlu1 %v7679_v27, %s7026_s24 }
0x17d0   :  { %v4521_v30 = vpop.xlane.xlu1 %4520 }
0x17d1   :  { %v4522_v31 = vsub.f32 %v4515_v15, %v4521_v30 }
0x17d3   :  { %v4523_v32 = vmul.f32 1.442695, %v4522_v31 }
0x17d5   :  { %6971 = vpow2.f32 %v4523_v32 }
0x17e2   :  { %v6972_v33 = vpop.eup %6971 }
0x17e3   :  { %v4525_v16 = vsel %vm299_vm2, %v6972_v33, 0.0 }
0x17e4   :  { %4526 = vadd.xlane.f32.xlu0 %v4525_v16 }
0x17fa   :  { %4607 = vrot.lane.b32.xlu0 %v1877_v53, %s7023_s8  ;;  %v4531_v53 = vpop.permute.xlu1 %4530 }
0x17fe   :  { %5127 = vrot.lane.b32.xlu0 %v7148_v17, %s7027_s25  ;;  %v4828_v25 = vpop.permute.xlu1 %4827 }
0x1802   :  { %4975 = vrot.lane.b32.xlu0 %v2243_v4, %s7023_s8  ;;  %v5126_v52 = vpop.permute.xlu1 %5125 }
0x186d   :  { %v4527_v3 = vpop.xlane.xlu0 %4526 }
0x186e   :  { %6973 = vrcp.f32 %v4527_v3 }
0x1871   :  { %v4608_v34 = vpop.permute.xlu0 %4607 }
0x1875   :  { %v5128_v4 = vpop.permute.xlu0 %5127 }
0x1879   :  { %v4976_v2 = vpop.permute.xlu0 %4975 }
0x187b   :  { %v6974_v27 = vpop.eup %6973 }
0x187c   :  { %v4529_v0 = vmul.f32 %v6974_v27, %v6972_v33 }
0x187e   :  { %6800 = vmatpush3.xpose.msk.msra.mxu0 %vm299_vm2, %v4529_v0  ;;  %6805 = vmatpush3.xpose.msk.msra.mxu1 %vm299_vm2, %v4529_v0 }
0x187f   :  { %6809 = vmatprep.subr.mxu0 %v7018_v13  ;;  %6820 = vmatprep.subr.mxu1 %v7018_v13 }
0x1881   :  { %6802 = vmatmul.mubr.msk.f32.vlgmr.msra.gmra.mxu0 %vm299_vm2, %v4531_v53  ;;  %6807 = vmatmul.mubr.msk.f32.vlgmr.msra.gmra.mxu1 %vm299_vm2, %v4608_v34 }
0x1882   :  { %6810 = vmatpush3.xpose.msk.msra.mxu0 %vm299_vm2, %v7821_v42  ;;  %6821 = vmatpush3.xpose.msk.msra.mxu1 %vm299_vm2, %v7828_v1 }
0x1883   :  { %6811 = vmatprep.subr.mxu0 %v7018_v13  ;;  %6822 = vmatprep.subr.mxu1 %v7018_v13 }
0x1884   :  { %6817 = vmatprep.mubr.msk.f32.mxu0 %vm7019_vm1, %v7018_v13  ;;  %6828 = vmatprep.mubr.msk.f32.mxu1 %vm7019_vm1, %v7018_v13 }
0x1886   :  { %6812 = vmatpush3.xpose.msk.msra.mxu0 %vm299_vm2, %v7841_v40  ;;  %6823 = vmatpush3.xpose.msk.msra.mxu1 %vm299_vm2, %v7848_v41 }
0x1887   :  { %6813 = vmatprep.subr.mxu0 %v7018_v13  ;;  %6824 = vmatprep.subr.mxu1 %v7018_v13 }
0x188a   :  { %6814 = vmatpush3.xpose.msk.msra.mxu0 %vm299_vm2, %v7857_v43  ;;  %6825 = vmatpush3.xpose.msk.msra.mxu1 %vm299_vm2, %v7864_v22 }
0x188b   :  { %6815 = vmatprep.subr.mxu0 %v7018_v13  ;;  %6826 = vmatprep.subr.mxu1 %v7018_v13 }
0x188e   :  { %6816 = vmatpush3.xpose.msk.msra.mxu0 %vm299_vm2, %v7873_v21  ;;  %6827 = vmatpush3.xpose.msk.msra.mxu1 %vm299_vm2, %v7880_v19 }
0x188f   :  { %6831 = vmatprep.subr.mxu0 %v7018_v13  ;;  %6836 = vmatprep.subr.mxu1 %v7018_v13 }
0x1941   :  { %v4603_v17 = vpop.f32.mrf.mxu0  ;;  %v4677_v51 = vpop.f32.mrf.mxu1 }
0x1942   :  { %6818 = vmatmul.mubr.msk.f32.vlgmr.msra.gmra.mxu0 %vm299_vm2, %v4677_v51  ;;  %6829 = vmatmul.mubr.msk.f32.vlgmr.msra.gmra.mxu1 %vm299_vm2, %v4603_v17 }
0x1943   :  { %6832 = vmatpush3.xpose.msk.msra.mxu0 %vm299_vm2, %v4529_v0  ;;  %v6803_v50 = vpop.f32.mrf.mxu0  ;;  %v6808_v35 = vpop.f32.mrf.mxu1  ;;  %6833 = vmatprep.mubr.msk.f32.mxu0 %vm7019_vm1, %v7018_v13 }
0x1944   :  { %6847 = vmatprep.subr.mxu0 %v7018_v13  ;;  %6837 = vmatpush3.xpose.msk.msra.mxu1 %vm299_vm2, %v7895_v7 }
0x1945   :  { %6838 = vmatprep.subr.mxu1 %v7018_v13  ;;  %6844 = vmatprep.mubr.msk.f32.mxu1 %vm7019_vm1, %v7018_v13 }
0x1946   :  { %6834 = vmatmul.mubr.msk.f32.vlgmr.msra.gmra.mxu0 %vm299_vm2, %v4828_v25 }
0x1947   :  { %6848 = vmatpush3.xpose.msk.msra.mxu0 %vm299_vm2, %v4529_v0  ;;  %6849 = vmatprep.mubr.msk.f32.mxu0 %vm7019_vm1, %v7018_v13 }
0x1948   :  { %6839 = vmatpush3.xpose.msk.msra.mxu1 %vm299_vm2, %v7909_v8  ;;  %6852 = vmatprep.subr.mxu0 %v7018_v13 }
0x1949   :  { %6840 = vmatprep.subr.mxu1 %v7018_v13 }
0x194a   :  { %6850 = vmatmul.mubr.msk.f32.vlgmr.msra.gmra.mxu0 %vm299_vm2, %v4976_v2 }
0x194b   :  { %6853 = vmatpush3.xpose.msk.msra.mxu0 %vm299_vm2, %v7919_v37  ;;  %6860 = vmatprep.mubr.msk.f32.mxu0 %vm7019_vm1, %v7018_v13 }
0x194c   :  { %6841 = vmatpush3.xpose.msk.msra.mxu1 %vm299_vm2, %v7928_v44  ;;  %6854 = vmatprep.subr.mxu0 %v7018_v13 }
0x194d   :  { %6842 = vmatprep.subr.mxu1 %v7018_v13 }
0x194f   :  { %6855 = vmatpush3.xpose.msk.msra.mxu0 %vm299_vm2, %v7937_v38 }
0x1950   :  { %6843 = vmatpush3.xpose.msk.msra.mxu1 %vm299_vm2, %v7944_v46  ;;  %6856 = vmatprep.subr.mxu0 %v7018_v13 }
0x1951   :  { %6863 = vmatprep.subr.mxu1 %v7018_v13 }
0x1953   :  { %6857 = vmatpush3.xpose.msk.msra.mxu0 %vm299_vm2, %v7953_v39 }
0x1954   :  { %6858 = vmatprep.subr.mxu0 %v7018_v13 }
0x1957   :  { %6859 = vmatpush3.xpose.msk.msra.mxu0 %vm299_vm2, %v7961_v47 }
0x1958   :  { %6873 = vmatprep.subr.mxu0 %v7018_v13 }
0x1a02   :  { %v4750_v24 = vpop.f32.mrf.mxu0  ;;  %v4823_v56 = vpop.f32.mrf.mxu1 }
0x1a03   :  { %v4824_v6 = vadd.f32 %v4823_v56, %v4750_v24 }
0x1a04   :  { %v6819_v45 = vpop.f32.mrf.mxu0  ;;  %v6830_v36 = vpop.f32.mrf.mxu1 }
0x1a06   :  { %v4897_v48 = vpop.f32.mrf.mxu0 }
0x1a07   :  { %6845 = vmatmul.mubr.msk.f32.vlgmr.msra.gmra.mxu1 %vm299_vm2, %v4897_v48 }
0x1a08   :  { %6864 = vmatpush3.xpose.msk.msra.mxu1 %vm299_vm2, %v5128_v4  ;;  %v6835_v49 = vpop.f32.mrf.mxu0  ;;  %6865 = vmatprep.mubr.msk.f32.mxu1 %vm7019_vm1, %v7018_v13 }
0x1a09   :  { %6868 = vmatprep.subr.mxu1 %v7018_v13 }
0x1a0a   :  { %v5045_v54 = vpop.f32.mrf.mxu0 }
0x1a0b   :  { %6861 = vmatmul.mubr.msk.f32.vlgmr.msra.gmra.mxu0 %vm299_vm2, %v5045_v54  ;;  %6866 = vmatmul.mubr.msk.f32.vlgmr.msra.gmra.mxu1 %vm299_vm2, %v5126_v52 }
0x1a0c   :  { %v6851_v57 = vpop.f32.mrf.mxu0  ;;  %6870 = vmatprep.mubr.msk.f32.mxu1 %vm7019_vm1, %v7018_v13  ;;  %6875 = vmatprep.mubr.msk.f32.mxu0 %vm7019_vm1, %v7018_v13 }
0x1ac7   :  { %v4970_v58 = vpop.f32.mrf.mxu1 }
0x1ac8   :  { %v4974_v60 = vadd.f32 %v4970_v58, %v4824_v6 }
0x1ac9   :  { %v6846_v59 = vpop.f32.mrf.mxu1 }
0x1acb   :  { %v5118_v61 = vpop.f32.mrf.mxu0  ;;  %v5199_v62 = vpop.f32.mrf.mxu1 }
0x1acc   :  { %v5122_v63 = vadd.f32 %v5118_v61, %v4974_v60  ;;  %v5203_v11 = vsel %vm299_vm2, %v5199_v62, -inf }
0x1acd   :  { %v6862_v12 = vpop.f32.mrf.mxu0  ;;  %5204 = vmax.xlane.f32.xlu1 %v5203_v11  ;;  %v6867_v14 = vpop.f32.mrf.mxu1 }
0x1ace   :  { %v5123_v15 = vadd.f32 %v7981_v28, %v5122_v63 }
0x1ad0   :  { %5124 = vst.msk [vmem:[#allocation2 + $0xc] sm:$0x3] %vm1030_vm3, %v5123_v15 }
0x1ade   :  { %5214 = vrot.lane.b32.xlu1 %v7588_v55, %s7023_s8 }
0x1ae2   :  { %5511 = vrot.lane.b32.xlu1 %v2776_v9, %s7023_s8 }
0x1b56   :  { %v5205_v18 = vpop.xlane.xlu1 %5204 }
0x1b57   :  { %v5206_v20 = vsub.f32 %v5199_v62, %v5205_v18 }
0x1b59   :  { %v5207_v23 = vmul.f32 1.442695, %v5206_v20 }
0x1b5a   :  { %v5215_v32 = vpop.permute.xlu1 %5214 }
0x1b5b   :  { %6975 = vpow2.f32 %v5207_v23 }
0x1b68   :  { %v6976_v26 = vpop.eup %6975 }
0x1b69   :  { %v5209_v29 = vsel %vm299_vm2, %v6976_v26, 0.0 }
0x1b6a   :  { %5210 = vadd.xlane.f32.xlu0 %v5209_v29 }
0x1b80   :  { %5291 = vrot.lane.b32.xlu0 %v2557_v5, %s7023_s8 }
0x1b84   :  { %5659 = vrot.lane.b32.xlu0 %v2923_v10, %s7023_s8  ;;  %s5814_s8 = sshll.u32 %s7028_s6, 4  ;;  %s5815_s8 = int_to_ptr.vmem [resolvable:$true] %s5814_s8 }
0x1b85   :  { %s6996_s24 = scalar_lea.vmem %s5815_s8, 256  ;;  %p7001_p1 = scmp.lt.s32.totalorder %s5815_s8, %s5815_s8 }
0x1b86   :  { %p6997_p0 = scmp.ne.s32.totalorder %s5815_s8, %s6996_s24  ;;  %p7002_p2 = scmp.lt.s32.totalorder %s6996_s24, %s6996_s24 }
0x1b88   :  { %p7003_p3 = por %p7002_p2, %p7001_p1 }
0x1b8a   :  { %p7004_p4 = pnand %p7003_p3, %p6997_p0 }
0x1bf3   :  { %v5211_v30 = vpop.xlane.xlu0 %5210 }
0x1bf4   :  { %6977 = vrcp.f32 %v5211_v30 }
0x1bf7   :  { %v5292_v33 = vpop.permute.xlu0 %5291 }
0x1c01   :  { %v6978_v31 = vpop.eup %6977 }
0x1c02   :  { %v5213_v9 = vmul.f32 %v6978_v31, %v6976_v26 }
0x1c04   :  { %6869 = vmatpush3.xpose.msk.msra.mxu1 %vm299_vm2, %v5213_v9  ;;  %6874 = vmatpush3.xpose.msk.msra.mxu0 %vm299_vm2, %v5213_v9 }
0x1c05   :  { %6878 = vmatprep.subr.mxu1 %v7018_v13  ;;  %6889 = vmatprep.subr.mxu0 %v7018_v13 }
0x1c07   :  { %6871 = vmatmul.mubr.msk.f32.vlgmr.msra.gmra.mxu1 %vm299_vm2, %v5215_v32  ;;  %6876 = vmatmul.mubr.msk.f32.vlgmr.msra.gmra.mxu0 %vm299_vm2, %v5292_v33 }
0x1c08   :  { %6879 = vmatpush3.xpose.msk.msra.mxu1 %vm299_vm2, %v7821_v42  ;;  %6890 = vmatpush3.xpose.msk.msra.mxu0 %vm299_vm2, %v7828_v1  ;;  %v5512_v1 = vpop.permute.xlu1 %5511 }
0x1c09   :  { %6880 = vmatprep.subr.mxu1 %v7018_v13  ;;  %6891 = vmatprep.subr.mxu0 %v7018_v13 }
0x1c0a   :  { %6886 = vmatprep.mubr.msk.f32.mxu1 %vm7019_vm1, %v7018_v13  ;;  %6897 = vmatprep.mubr.msk.f32.mxu0 %vm7019_vm1, %v7018_v13 }
0x1c0c   :  { %6881 = vmatpush3.xpose.msk.msra.mxu1 %vm299_vm2, %v7841_v40  ;;  %6892 = vmatpush3.xpose.msk.msra.mxu0 %vm299_vm2, %v7848_v41  ;;  %v5660_v40 = vpop.permute.xlu0 %5659 }
0x1c0d   :  { %6882 = vmatprep.subr.mxu1 %v7018_v13  ;;  %6893 = vmatprep.subr.mxu0 %v7018_v13 }
0x1c10   :  { %6883 = vmatpush3.xpose.msk.msra.mxu1 %vm299_vm2, %v7857_v43  ;;  %6894 = vmatpush3.xpose.msk.msra.mxu0 %vm299_vm2, %v7864_v22 }
0x1c11   :  { %6884 = vmatprep.subr.mxu1 %v7018_v13  ;;  %6895 = vmatprep.subr.mxu0 %v7018_v13 }
0x1c14   :  { %6885 = vmatpush3.xpose.msk.msra.mxu1 %vm299_vm2, %v7873_v21  ;;  %6896 = vmatpush3.xpose.msk.msra.mxu0 %vm299_vm2, %v7880_v19 }
0x1c15   :  { %6900 = vmatprep.subr.mxu1 %v7018_v13  ;;  %6905 = vmatprep.subr.mxu0 %v7018_v13 }
0x1cc7   :  { %v5287_v55 = vpop.f32.mrf.mxu1  ;;  %v5361_v5 = vpop.f32.mrf.mxu0 }
0x1cc8   :  { %6887 = vmatmul.mubr.msk.f32.vlgmr.msra.gmra.mxu1 %vm299_vm2, %v5361_v5  ;;  %6898 = vmatmul.mubr.msk.f32.vlgmr.msra.gmra.mxu0 %vm299_vm2, %v5287_v55 }
0x1cc9   :  { %6901 = vmatpush3.xpose.msk.msra.mxu1 %vm299_vm2, %v5213_v9  ;;  %v6872_v10 = vpop.f32.mrf.mxu1  ;;  %v6877_v42 = vpop.f32.mrf.mxu0  ;;  %6902 = vmatprep.mubr.msk.f32.mxu1 %vm7019_vm1, %v7018_v13 }
0x1cca   :  { %6916 = vmatprep.subr.mxu1 %v7018_v13  ;;  %6906 = vmatpush3.xpose.msk.msra.mxu0 %vm299_vm2, %v7895_v7 }
0x1ccb   :  { %6907 = vmatprep.subr.mxu0 %v7018_v13  ;;  %6913 = vmatprep.mubr.msk.f32.mxu0 %vm7019_vm1, %v7018_v13 }
0x1ccc   :  { %6903 = vmatmul.mubr.msk.f32.vlgmr.msra.gmra.mxu1 %vm299_vm2, %v5512_v1 }
0x1ccd   :  { %6917 = vmatpush3.xpose.msk.msra.mxu1 %vm299_vm2, %v5213_v9  ;;  %6918 = vmatprep.mubr.msk.f32.mxu1 %vm7019_vm1, %v7018_v13 }
0x1cce   :  { %6921 = vmatprep.subr.mxu1 %v7018_v13  ;;  %6908 = vmatpush3.xpose.msk.msra.mxu0 %vm299_vm2, %v7909_v8 }
0x1ccf   :  { %6909 = vmatprep.subr.mxu0 %v7018_v13 }
0x1cd0   :  { %6919 = vmatmul.mubr.msk.f32.vlgmr.msra.gmra.mxu1 %vm299_vm2, %v5660_v40 }
0x1cd1   :  { %6922 = vmatpush3.xpose.msk.msra.mxu1 %vm299_vm2, %v7919_v37  ;;  %6929 = vmatprep.mubr.msk.f32.mxu1 %vm7019_vm1, %v7018_v13 }
0x1cd2   :  { %6923 = vmatprep.subr.mxu1 %v7018_v13  ;;  %6910 = vmatpush3.xpose.msk.msra.mxu0 %vm299_vm2, %v7928_v44 }
0x1cd3   :  { %6911 = vmatprep.subr.mxu0 %v7018_v13 }
0x1cd5   :  { %6924 = vmatpush3.xpose.msk.msra.mxu1 %vm299_vm2, %v7937_v38 }
0x1cd6   :  { %6925 = vmatprep.subr.mxu1 %v7018_v13  ;;  %6912 = vmatpush3.xpose.msk.msra.mxu0 %vm299_vm2, %v7944_v46 }
0x1cd9   :  { %6926 = vmatpush3.xpose.msk.msra.mxu1 %vm299_vm2, %v7953_v39 }
0x1cda   :  { %6927 = vmatprep.subr.mxu1 %v7018_v13 }
0x1cdd   :  { %6928 = vmatpush3.xpose.msk.msra.mxu1 %vm299_vm2, %v7961_v47 }
0x1d88   :  { %v5434_v41 = vpop.f32.mrf.mxu1  ;;  %v5507_v43 = vpop.f32.mrf.mxu0 }
0x1d89   :  { %v5508_v22 = vadd.f32 %v5507_v43, %v5434_v41 }
0x1d8a   :  { %v6888_v21 = vpop.f32.mrf.mxu1  ;;  %v6899_v19 = vpop.f32.mrf.mxu0 }
0x1d8c   :  { %v5581_v7 = vpop.f32.mrf.mxu1 }
0x1d8d   :  { %6914 = vmatmul.mubr.msk.f32.vlgmr.msra.gmra.mxu0 %vm299_vm2, %v5581_v7 }
0x1d8e   :  { %v6904_v8 = vpop.f32.mrf.mxu1 }
0x1d90   :  { %v5729_v37 = vpop.f32.mrf.mxu1 }
0x1d91   :  { %6930 = vmatmul.mubr.msk.f32.vlgmr.msra.gmra.mxu1 %vm299_vm2, %v5729_v37 }
0x1d92   :  { %v6920_v44 = vpop.f32.mrf.mxu1 }
0x1e4d   :  { %v5654_v38 = vpop.f32.mrf.mxu0 }
0x1e4e   :  { %v5658_v39 = vadd.f32 %v5654_v38, %v5508_v22 }
0x1e4f   :  { %v6915_v46 = vpop.f32.mrf.mxu0 }
0x1e51   :  { %v5802_v13 = vpop.f32.mrf.mxu1 }
0x1e52   :  { %v5806_v47 = vadd.f32 %v5802_v13, %v5658_v39 }
0x1e53   :  { %v6931_v16 = vpop.f32.mrf.mxu1 }
0x1e54   :  { %v5807_v3 = vadd.f32 %v7981_v28, %v5806_v47 }
0x1e56   :  { %5808 = vst.msk [vmem:[#allocation2 + $0xe] sm:$0x3] %vm1030_vm3, %v5807_v3 }
0x1e57   :  { %7007 = shalt.err (!%p7004_p4)
}
0x1e58   :  { %s7029_s25 = smov 128   ;;  %s7030_s10 = smov 8  }
0x1e59   :  { %5820 = dma.vmem_to_hbm [thread:$0]  %s5815_s8, 256, %s8187_s7, [#allocation3], %s7029_s25, %s7029_s25, %s7030_s10  }
0x1e5a   :  { %7016 = dma.done.wait [#allocation3], 256  }
0x1e5b   :  { %7017 = vsyncadd [#allocation3], 4294967040 }
0x1e5c   :  { %5824 = vsyncpa [#allocation3], 1 }

</bundles_post_ra>
